<compile_context>
chip_gen: v6e
topology: v6e:2x2x1
jax: 0.10.0
libtpu: 0.0.40
codegen_flags: <defaults>
</compile_context>

<pallas_src>
import functools
import math

import jax
import jax.numpy as jnp
from jax import lax
from jax.experimental import pallas as pl
from jax.experimental.pallas import tpu as pltpu

LANE = 128     # each gate padded to a 128-lane boundary
SUBLANE = 8    # batch padded to a multiple of 8 sublanes


def _round_up(x, m):
    return ((x + m - 1) // m) * m


def _vmem_capacity_bytes():
    try:
        return int(pltpu.get_tpu_info().vmem_capacity_bytes)
    except Exception:
        return 64 * 1024 * 1024   # v7x-safe fallback


def _lstm_recurrent_kernel(gates_ref, whh_ref, out_ref, h_scr, c_scr, *,
                           chunk, hidden_pad, seq_len, n_chunks,
                           num_directions, time_padded):
    """One grid step = `chunk` timesteps of one direction / one batch block.

    gates_ref: (chunk, Bb, 4*Hp) bf16  precomputed x_t @ W_ih^T + bias
    whh_ref:   (Hp, 4*Hp)        bf16  recurrent weights (transposed, padded)
    out_ref:   (chunk, Bb, Hp)   bf16  hidden states for this chunk
    h_scr/c_scr: (Bb, Hp) f32 state carried across chunks of one direction.
    """
    d = pl.program_id(1)   # 0 = forward, 1 = backward
    c = pl.program_id(2)   # chunk counter in processing order

    @pl.when(c == 0)
    def _():
        h_scr[...] = jnp.zeros_like(h_scr)
        c_scr[...] = jnp.zeros_like(c_scr)

    Hp = hidden_pad
    if num_directions == 1:
        c_eff = c                                  # static-friendly path
    else:
        c_eff = c + d * (n_chunks - 1 - 2 * c)     # chunk in natural time order

    def step(s, masked):
        if num_directions == 1:
            tt = s                                  # static index
        else:
            tt = s + d * (chunk - 1 - 2 * s)        # reversed for backward
        h = h_scr[...]
        c_prev = c_scr[...]
        # NOTE: whh_ref[...] is fed to the dot inside the step on purpose: no
        # weight value is kept live across the whole unrolled chunk (avoids
        # vreg spill pressure at Hp>=128).
        # TODO(synk): pltpu.matmul_push_rhs / matmul_acc_lhs / matmul_pop could
        # stage W_hh in the MXU once per chunk (biggest remaining lever for
        # the small-batch serial path); plain jnp.dot kept for robustness.
        g = gates_ref[tt].astype(jnp.float32) + jnp.dot(
            h.astype(jnp.bfloat16), whh_ref[...],
            preferred_element_type=jnp.float32)
        # PyTorch gate order [i, f, g, o]; each slice is 128-lane aligned.
        i_g = jax.nn.sigmoid(g[:, 0 * Hp:1 * Hp])
        f_g = jax.nn.sigmoid(g[:, 1 * Hp:2 * Hp])
        g_g = jnp.tanh(g[:, 2 * Hp:3 * Hp])
        o_g = jax.nn.sigmoid(g[:, 3 * Hp:4 * Hp])
        c_new = f_g * c_prev + i_g * g_g
        h_new = o_g * jnp.tanh(c_new)
        if masked:
            # padded timesteps (time index >= seq_len) are no-ops
            valid = (c_eff * chunk + tt) < seq_len
            c_new = jnp.where(valid, c_new, c_prev)
            h_new = jnp.where(valid, h_new, h)
        h_scr[...] = h_new
        c_scr[...] = c_new
        out_ref[tt] = h_new.astype(out_ref.dtype)

    def run_chunk(masked):
        if chunk <= 32:
            for s in range(chunk):          # fully unrolled, small & static
                step(s, masked)
        else:
            def body(s, carry):
                step(s, masked)
                return carry
            lax.fori_loop(0, chunk, body, 0, unroll=8)

    # Masking is only required for the BACKWARD direction's first processed
    # chunk (the chunk containing padded timesteps, processed from zero
    # state).  Forward padded steps come after all real steps and their
    # (finite) garbage never influences real outputs.
    if (not time_padded) or num_directions == 1:
        run_chunk(masked=False)
    else:
        is_pad_chunk = jnp.logical_and(d == 1, c_eff == n_chunks - 1)

        @pl.when(is_pad_chunk)
        def _():
            run_chunk(masked=True)

        @pl.when(jnp.logical_not(is_pad_chunk))
        def _():
            run_chunk(masked=False)


def _run_recurrence(gates, whh, *, seq_len, chunk, hidden_pad, batch_block,
                    num_directions, vmem_limit):
    """gates: (Tpad, Bp, ND*4*Hp) bf16, whh: (ND, Hp, 4*Hp) bf16 ->
    hidden:  (Tpad, Bp, ND*Hp) bf16 (direction d occupies columns d*Hp..)."""
    t_pad, bp, _ = gates.shape
    hp = hidden_pad
    nd = num_directions
    bb = batch_block
    nb = bp // bb
    n_chunks = t_pad // chunk

    kernel = functools.partial(
        _lstm_recurrent_kernel, chunk=chunk, hidden_pad=hp, seq_len=seq_len,
        n_chunks=n_chunks, num_directions=nd, time_padded=(t_pad != seq_len))

    def rev(c, d):
        # backward direction reads/writes chunks in reversed time order
        return c + d * (n_chunks - 1 - 2 * c)

    # TODO(synk): pipeline_mode=pl.Buffered(1) on the W_hh spec would drop its
    # second (never used) DMA buffer; omitted for lowering robustness.
    return pl.pallas_call(
        kernel,
        out_shape=jax.ShapeDtypeStruct((t_pad, bp, nd * hp), jnp.bfloat16),
        grid=(nb, nd, n_chunks),
        in_specs=[
            pl.BlockSpec((chunk, bb, 4 * hp), lambda b, d, c: (rev(c, d), b, d)),
            pl.BlockSpec((None, hp, 4 * hp), lambda b, d, c: (d, 0, 0)),
        ],
        out_specs=pl.BlockSpec((chunk, bb, hp), lambda b, d, c: (rev(c, d), b, d)),
        scratch_shapes=[
            pltpu.VMEM((bb, hp), jnp.float32),   # h carry
            pltpu.VMEM((bb, hp), jnp.float32),   # c carry
        ],
        compiler_params=pltpu.CompilerParams(
            dimension_semantics=("parallel", "parallel", "arbitrary"),
            vmem_limit_bytes=int(vmem_limit)),
    )(gates, whh)


class LSTMPallas:
    """JAX/Pallas equivalent of the reference LSTM module (inference forward)."""

    def __init__(self, inp_dim, hidden_size, num_layers, bias, batch_first,
                 dropout, bidirectional, key, time_chunk=None):
        self.input_dim = inp_dim
        self.hidden_size = hidden_size
        self.num_layers = num_layers
        self.bidirectional = bidirectional
        self.num_directions = 2 if bidirectional else 1
        self.out_dim = hidden_size + int(bidirectional) * hidden_size
        self.bias = bias
        self.time_chunk = time_chunk        # optional cap; None -> VMEM-derived
        # TODO(synk): inter-layer dropout is a train-time-only op in nn.LSTM;
        # this forward is eval-mode, so dropout is intentionally a no-op.
        self.dropout = dropout

        H = hidden_size
        Hp = _round_up(H, LANE)
        self.hidden_pad = Hp
        ND = self.num_directions

        k = 1.0 / math.sqrt(H)
        self.in_proj = []     # [layer] -> (W_ih^T fused+padded bf16, fused bias f32)
        self.whh = []         # [layer] -> (ND, Hp, 4Hp) bf16
        self.raw_params = []  # [layer][dir] -> (w_ih, w_hh, b_ih + b_hh) f32 (reference)
        for layer in range(num_layers):
            in_dim_real = inp_dim if layer == 0 else ND * H
            in_rows = inp_dim if layer == 0 else ND * Hp   # padded input layout
            wih_all = jnp.zeros((in_rows, ND, 4, Hp), jnp.float32)
            bias_all = jnp.zeros((ND, 4, Hp), jnp.float32)
            whh_dir, raw_dir = [], []
            for d in range(ND):
                key, k1, k2, k3, k4 = jax.random.split(key, 5)
                w_ih = jax.random.uniform(k1, (4 * H, in_dim_real), jnp.float32, -k, k)
                w_hh = jax.random.uniform(k2, (4 * H, H), jnp.float32, -k, k)
                if bias:
                    b_ih = jax.random.uniform(k3, (4 * H,), jnp.float32, -k, k)
                    b_hh = jax.random.uniform(k4, (4 * H,), jnp.float32, -k, k)
                else:
                    b_ih = jnp.zeros((4 * H,), jnp.float32)
                    b_hh = jnp.zeros((4 * H,), jnp.float32)
                b_sum = b_ih + b_hh

                w_ih_t = jnp.transpose(w_ih)               # (in_dim_real, 4H)
                if layer == 0:
                    wih_all = wih_all.at[:, d, :, :H].set(
                        w_ih_t.reshape(in_dim_real, 4, H))
                else:
                    # input features of layer>0 arrive in the padded layout
                    # [dir0: Hp lanes (H real), dir1: Hp lanes (H real)]
                    for dd in range(ND):
                        wih_all = wih_all.at[dd * Hp:dd * Hp + H, d, :, :H].set(
                            w_ih_t[dd * H:(dd + 1) * H].reshape(H, 4, H))
                bias_all = bias_all.at[d, :, :H].set(b_sum.reshape(4, H))

                whh_t = jnp.zeros((Hp, 4, Hp), jnp.float32)
                whh_t = whh_t.at[:H, :, :H].set(
                    jnp.transpose(w_hh).reshape(H, 4, H))
                whh_dir.append(whh_t.reshape(Hp, 4 * Hp).astype(jnp.bfloat16))
                raw_dir.append((w_ih, w_hh, b_sum))

            self.in_proj.append(
                (wih_all.reshape(in_rows, ND * 4 * Hp).astype(jnp.bfloat16),
                 bias_all.reshape(ND * 4 * Hp)))
            self.whh.append(jnp.stack(whh_dir, axis=0))
            self.raw_params.append(raw_dir)

    def __call__(self, x):
        # x: (T, B, input_dim); h0/c0 are zeros (handled in-kernel at chunk 0).
        T, B, _ = x.shape
        H, Hp, ND = self.hidden_size, self.hidden_pad, self.num_directions

        # Batch blocking: one block for small B, 128-row blocks otherwise
        # (matches MXU LHS height and bounds per-block VMEM).
        if B > 128:
            bb = 128
        else:
            bb = _round_up(B, SUBLANE)
        Bp = _round_up(B, bb)

        # VMEM-budget-derived chunk size + scoped-VMEM limit (generation aware:
        # ~96 MiB usable on v5e/v6e, ~48 MiB on v7x).
        vmem_budget = min(_vmem_capacity_bytes() * 3 // 4, 100 * 1024 * 1024)
        fixed = 2 * Hp * 4 * Hp * 2      # W_hh double buffer (bf16)
        fixed += 2 * bb * Hp * 4         # h/c scratch (f32)
        fixed += 2 * 1024 * 1024         # compiler-internal slack
        per_step = 2 * bb * 5 * Hp * 2   # gates + out, double-buffered, bf16
        chunk_cap = max(1, (vmem_budget - fixed) // per_step)
        chunk_cap = int(min(chunk_cap, 64, T))
        if self.time_chunk is not None:
            chunk_cap = max(1, min(chunk_cap, int(self.time_chunk)))
        n_chunks = -(-T // chunk_cap)
        chunk = -(-T // n_chunks)        # re-balance to minimize time padding
        Tpad = n_chunks * chunk

        # Pad the (small) input once: time + batch; layers>0 are already padded.
        seq = jnp.pad(x.astype(jnp.bfloat16),
                      ((0, Tpad - T), (0, Bp - B), (0, 0)))
        for layer in range(self.num_layers):
            wih_all, bias_all = self.in_proj[layer]
            # One wide GEMM for all timesteps AND both directions; bias fused
            # in f32, then stored as bf16 for the streamed gates tensor.
            gates = (jnp.einsum('tbd,dg->tbg', seq, wih_all,
                                preferred_element_type=jnp.float32)
                     + bias_all).astype(jnp.bfloat16)    # (Tpad, Bp, ND*4Hp)
            seq = _run_recurrence(gates, self.whh[layer], seq_len=T,
                                  chunk=chunk, hidden_pad=Hp, batch_block=bb,
                                  num_directions=ND, vmem_limit=vmem_budget)
        # Single de-pad / de-interleave at the very end.
        parts = [seq[:T, :B, d * Hp:d * Hp + H] for d in range(ND)]
        out = jnp.concatenate(parts, axis=-1) if ND > 1 else parts[0]
        return out.astype(jnp.float32)   # (T, B, num_directions * H)


def _reference_lstm(x, model):
    """Pure-JAX (non-Pallas) reference with the same bf16 matmul/storage
    quantization as the kernel (bf16 gates, bf16 weight matmuls, f32 state)."""
    H = model.hidden_size
    seq = x.astype(jnp.float32)
    for layer in range(model.num_layers):
        outs = []
        for d in range(model.num_directions):
            w_ih, w_hh, b_sum = model.raw_params[layer][d]
            xs = seq if d == 0 else seq[::-1]
            gin = (jnp.einsum('tbd,gd->tbg', xs.astype(jnp.bfloat16),
                              w_ih.astype(jnp.bfloat16),
                              preferred_element_type=jnp.float32)
                   + b_sum).astype(jnp.bfloat16).astype(jnp.float32)
            h = jnp.zeros((seq.shape[1], H), jnp.float32)
            c = jnp.zeros((seq.shape[1], H), jnp.float32)
            hs = []
            for t in range(seq.shape[0]):
                g = gin[t] + jnp.dot(h.astype(jnp.bfloat16),
                                     jnp.transpose(w_hh).astype(jnp.bfloat16),
                                     preferred_element_type=jnp.float32)
                i_g = jax.nn.sigmoid(g[:, 0 * H:1 * H])
                f_g = jax.nn.sigmoid(g[:, 1 * H:2 * H])
                g_g = jnp.tanh(g[:, 2 * H:3 * H])
                o_g = jax.nn.sigmoid(g[:, 3 * H:4 * H])
                c = f_g * c + i_g * g_g
                h = o_g * jnp.tanh(c)
                hs.append(h)
            out = jnp.stack(hs, axis=0)
            if d == 1:
                out = out[::-1]
            outs.append(out)
        seq = jnp.concatenate(outs, axis=-1) if len(outs) > 1 else outs[0]
    return seq


if __name__ == "__main__":
    T, B, D, H, L = 8, 2, 16, 32, 2
    key = jax.random.PRNGKey(0)
    key, xkey = jax.random.split(key)
    x = jax.random.normal(xkey, (T, B, D), dtype=jnp.float32)

    model = LSTMPallas(inp_dim=D, hidden_size=H, num_layers=L, bias=True,
                       batch_first=False, dropout=0.0, bidirectional=True,
                       key=key)

    out = jax.block_until_ready(model(x))
    assert out.shape == (T, B, model.out_dim), out.shape
    assert bool(jnp.all(jnp.isfinite(out)))

    ref = jax.block_until_ready(_reference_lstm(x, model))
    err = float(jnp.max(jnp.abs(out - ref)))
    assert err < 2e-2, f"mismatch vs reference, max abs err = {err}"

    print("KERNEL_OK")
</pallas_src>

<mosaic_0001>
module attributes {stable_mosaic.version = 11 : i64} {
  func.func @_lstm_recurrent_kernel(%arg0: i32, %arg1: i32, %arg2: i32, %arg3: memref<8x8x512xbf16, #tpu.memory_space<vmem>>, %arg4: memref<1x128x512xbf16, #tpu.memory_space<vmem>>, %arg5: memref<8x8x128xbf16, #tpu.memory_space<vmem>>, %arg6: memref<8x128xf32, #tpu.memory_space<vmem>>, %arg7: memref<8x128xf32, #tpu.memory_space<vmem>>) attributes {dimension_semantics = [#tpu.dimension_semantics<parallel>, #tpu.dimension_semantics<parallel>, #tpu.dimension_semantics<arbitrary>], iteration_bounds = array<i64: 1, 2, 1>, scalar_prefetch = 0 : i64, scratch_operands = 2 : i64, tpu.core_type = #tpu.core_type<tc>, window_params = [{transform_indices = @transform_0, window_bounds = array<i64: 8, 8, 512>}, {transform_indices = @transform_1, window_bounds = array<i64: 1, 128, 512>}, {transform_indices = @transform_2, window_bounds = array<i64: 8, 8, 128>}]} {
    %c0_i32 = arith.constant 0 : i32
    %0 = arith.cmpi eq, %arg2, %c0_i32 : i32
    %1 = arith.extui %0 : i1 to i32
    %c0_i32_0 = arith.constant 0 : i32
    %2 = arith.cmpi ne, %1, %c0_i32_0 : i32
    scf.if %2 {
      %cst_156 = arith.constant 0.000000e+00 : f32
      %363 = vector.broadcast %cst_156 : f32 to vector<8x128xf32>
      %c0_157 = arith.constant 0 : index
      %c0_158 = arith.constant 0 : index
      %364 = vector.load %arg6[%c0_157, %c0_158] : memref<8x128xf32, #tpu.memory_space<vmem>>, vector<8x128xf32>
      tpu.vector_store %arg6[%c0_157, %c0_158], %363 {strides = array<i32>} : memref<8x128xf32, #tpu.memory_space<vmem>>, vector<8x128xf32>,
      %cst_159 = arith.constant 0.000000e+00 : f32
      %365 = vector.broadcast %cst_159 : f32 to vector<8x128xf32>
      %c0_160 = arith.constant 0 : index
      %c0_161 = arith.constant 0 : index
      %366 = vector.load %arg7[%c0_160, %c0_161] : memref<8x128xf32, #tpu.memory_space<vmem>>, vector<8x128xf32>
      tpu.vector_store %arg7[%c0_160, %c0_161], %365 {strides = array<i32>} : memref<8x128xf32, #tpu.memory_space<vmem>>, vector<8x128xf32>,
    } else {
    }
    %c7_i32 = arith.constant 7 : i32
    %3 = arith.muli %arg1, %c7_i32 : i32
    %c0_i32_1 = arith.constant 0 : i32
    %4 = arith.addi %c0_i32_1, %3 : i32
    %c0 = arith.constant 0 : index
    %c0_2 = arith.constant 0 : index
    %5 = vector.load %arg6[%c0, %c0_2] : memref<8x128xf32, #tpu.memory_space<vmem>>, vector<8x128xf32>
    %c0_3 = arith.constant 0 : index
    %c0_4 = arith.constant 0 : index
    %6 = vector.load %arg7[%c0_3, %c0_4] : memref<8x128xf32, #tpu.memory_space<vmem>>, vector<8x128xf32>
    %7 = arith.index_cast %4 : i32 to index
    %c0_5 = arith.constant 0 : index
    %c0_6 = arith.constant 0 : index
    %8 = vector.load %arg3[%7, %c0_5, %c0_6] : memref<8x8x512xbf16, #tpu.memory_space<vmem>>, vector<1x8x512xbf16>
    %9 = vector.shape_cast %8 : vector<1x8x512xbf16> to vector<8x512xbf16>
    %10 = arith.extf %9 : vector<8x512xbf16> to vector<8x512xf32>
    %11 = arith.truncf %5 : vector<8x128xf32> to vector<8x128xbf16>
    %c0_7 = arith.constant 0 : index
    %c0_8 = arith.constant 0 : index
    %c0_9 = arith.constant 0 : index
    %12 = vector.load %arg4[%c0_7, %c0_8, %c0_9] : memref<1x128x512xbf16, #tpu.memory_space<vmem>>, vector<1x128x512xbf16>
    %13 = vector.shape_cast %12 : vector<1x128x512xbf16> to vector<128x512xbf16>
    %cst = arith.constant dense<0.000000e+00> : vector<8x512xf32>
    %14 = tpu.matmul %11, %13, %cst {dimension_numbers = #tpu.dot_dimension_numbers<[1], [0], [0], [1], [0, 0, 1, 1], [], []>} : vector<8x128xbf16>, vector<128x512xbf16>, vector<8x512xf32> -> vector<8x512xf32>
    %15 = arith.addf %10, %14 : vector<8x512xf32>
    %16 = vector.extract_strided_slice %15 {offsets = [0, 0], sizes = [8, 128], strides = [1, 1]} : vector<8x512xf32> to vector<8x128xf32>
    %17 = arith.negf %16 : vector<8x128xf32>
    %18 = math.exp %17 : vector<8x128xf32>
    %cst_10 = arith.constant 1.000000e+00 : f32
    %19 = vector.broadcast %cst_10 : f32 to vector<8x128xf32>
    %20 = arith.addf %19, %18 : vector<8x128xf32>
    %21 = arith.divf %19, %20 : vector<8x128xf32>
    %22 = vector.extract_strided_slice %15 {offsets = [0, 128], sizes = [8, 128], strides = [1, 1]} : vector<8x512xf32> to vector<8x128xf32>
    %23 = arith.negf %22 : vector<8x128xf32>
    %24 = math.exp %23 : vector<8x128xf32>
    %cst_11 = arith.constant 1.000000e+00 : f32
    %25 = vector.broadcast %cst_11 : f32 to vector<8x128xf32>
    %26 = arith.addf %25, %24 : vector<8x128xf32>
    %27 = arith.divf %25, %26 : vector<8x128xf32>
    %28 = vector.extract_strided_slice %15 {offsets = [0, 256], sizes = [8, 128], strides = [1, 1]} : vector<8x512xf32> to vector<8x128xf32>
    %29 = math.tanh %28 : vector<8x128xf32>
    %30 = vector.extract_strided_slice %15 {offsets = [0, 384], sizes = [8, 128], strides = [1, 1]} : vector<8x512xf32> to vector<8x128xf32>
    %31 = arith.negf %30 : vector<8x128xf32>
    %32 = math.exp %31 : vector<8x128xf32>
    %cst_12 = arith.constant 1.000000e+00 : f32
    %33 = vector.broadcast %cst_12 : f32 to vector<8x128xf32>
    %34 = arith.addf %33, %32 : vector<8x128xf32>
    %35 = arith.divf %33, %34 : vector<8x128xf32>
    %36 = arith.mulf %27, %6 : vector<8x128xf32>
    %37 = arith.mulf %21, %29 : vector<8x128xf32>
    %38 = arith.addf %36, %37 : vector<8x128xf32>
    %39 = math.tanh %38 : vector<8x128xf32>
    %40 = arith.mulf %35, %39 : vector<8x128xf32>
    %c0_13 = arith.constant 0 : index
    %c0_14 = arith.constant 0 : index
    %41 = vector.load %arg6[%c0_13, %c0_14] : memref<8x128xf32, #tpu.memory_space<vmem>>, vector<8x128xf32>
    tpu.vector_store %arg6[%c0_13, %c0_14], %40 {strides = array<i32>} : memref<8x128xf32, #tpu.memory_space<vmem>>, vector<8x128xf32>,
    %c0_15 = arith.constant 0 : index
    %c0_16 = arith.constant 0 : index
    %42 = vector.load %arg7[%c0_15, %c0_16] : memref<8x128xf32, #tpu.memory_space<vmem>>, vector<8x128xf32>
    tpu.vector_store %arg7[%c0_15, %c0_16], %38 {strides = array<i32>} : memref<8x128xf32, #tpu.memory_space<vmem>>, vector<8x128xf32>,
    %43 = arith.truncf %40 : vector<8x128xf32> to vector<8x128xbf16>
    %44 = arith.index_cast %4 : i32 to index
    %c0_17 = arith.constant 0 : index
    %c0_18 = arith.constant 0 : index
    %45 = vector.load %arg5[%44, %c0_17, %c0_18] : memref<8x8x128xbf16, #tpu.memory_space<vmem>>, vector<1x8x128xbf16>
    %46 = vector.shape_cast %45 : vector<1x8x128xbf16> to vector<8x128xbf16>
    %47 = vector.shape_cast %43 : vector<8x128xbf16> to vector<1x8x128xbf16>
    tpu.vector_store %arg5[%44, %c0_17, %c0_18], %47 {strides = array<i32>} : memref<8x8x128xbf16, #tpu.memory_space<vmem>>, vector<1x8x128xbf16>,
    %c5_i32 = arith.constant 5 : i32
    %48 = arith.muli %arg1, %c5_i32 : i32
    %c1_i32 = arith.constant 1 : i32
    %49 = arith.addi %c1_i32, %48 : i32
    %c0_19 = arith.constant 0 : index
    %c0_20 = arith.constant 0 : index
    %50 = vector.load %arg6[%c0_19, %c0_20] : memref<8x128xf32, #tpu.memory_space<vmem>>, vector<8x128xf32>
    %c0_21 = arith.constant 0 : index
    %c0_22 = arith.constant 0 : index
    %51 = vector.load %arg7[%c0_21, %c0_22] : memref<8x128xf32, #tpu.memory_space<vmem>>, vector<8x128xf32>
    %52 = arith.index_cast %49 : i32 to index
    %c0_23 = arith.constant 0 : index
    %c0_24 = arith.constant 0 : index
    %53 = vector.load %arg3[%52, %c0_23, %c0_24] : memref<8x8x512xbf16, #tpu.memory_space<vmem>>, vector<1x8x512xbf16>
    %54 = vector.shape_cast %53 : vector<1x8x512xbf16> to vector<8x512xbf16>
    %55 = arith.extf %54 : vector<8x512xbf16> to vector<8x512xf32>
    %56 = arith.truncf %50 : vector<8x128xf32> to vector<8x128xbf16>
    %c0_25 = arith.constant 0 : index
    %c0_26 = arith.constant 0 : index
    %c0_27 = arith.constant 0 : index
    %57 = vector.load %arg4[%c0_25, %c0_26, %c0_27] : memref<1x128x512xbf16, #tpu.memory_space<vmem>>, vector<1x128x512xbf16>
    %58 = vector.shape_cast %57 : vector<1x128x512xbf16> to vector<128x512xbf16>
    %cst_28 = arith.constant dense<0.000000e+00> : vector<8x512xf32>
    %59 = tpu.matmul %56, %58, %cst_28 {dimension_numbers = #tpu.dot_dimension_numbers<[1], [0], [0], [1], [0, 0, 1, 1], [], []>} : vector<8x128xbf16>, vector<128x512xbf16>, vector<8x512xf32> -> vector<8x512xf32>
    %60 = arith.addf %55, %59 : vector<8x512xf32>
    %61 = vector.extract_strided_slice %60 {offsets = [0, 0], sizes = [8, 128], strides = [1, 1]} : vector<8x512xf32> to vector<8x128xf32>
    %62 = arith.negf %61 : vector<8x128xf32>
    %63 = math.exp %62 : vector<8x128xf32>
    %cst_29 = arith.constant 1.000000e+00 : f32
    %64 = vector.broadcast %cst_29 : f32 to vector<8x128xf32>
    %65 = arith.addf %64, %63 : vector<8x128xf32>
    %66 = arith.divf %64, %65 : vector<8x128xf32>
    %67 = vector.extract_strided_slice %60 {offsets = [0, 128], sizes = [8, 128], strides = [1, 1]} : vector<8x512xf32> to vector<8x128xf32>
    %68 = arith.negf %67 : vector<8x128xf32>
    %69 = math.exp %68 : vector<8x128xf32>
    %cst_30 = arith.constant 1.000000e+00 : f32
    %70 = vector.broadcast %cst_30 : f32 to vector<8x128xf32>
    %71 = arith.addf %70, %69 : vector<8x128xf32>
    %72 = arith.divf %70, %71 : vector<8x128xf32>
    %73 = vector.extract_strided_slice %60 {offsets = [0, 256], sizes = [8, 128], strides = [1, 1]} : vector<8x512xf32> to vector<8x128xf32>
    %74 = math.tanh %73 : vector<8x128xf32>
    %75 = vector.extract_strided_slice %60 {offsets = [0, 384], sizes = [8, 128], strides = [1, 1]} : vector<8x512xf32> to vector<8x128xf32>
    %76 = arith.negf %75 : vector<8x128xf32>
    %77 = math.exp %76 : vector<8x128xf32>
    %cst_31 = arith.constant 1.000000e+00 : f32
    %78 = vector.broadcast %cst_31 : f32 to vector<8x128xf32>
    %79 = arith.addf %78, %77 : vector<8x128xf32>
    %80 = arith.divf %78, %79 : vector<8x128xf32>
    %81 = arith.mulf %72, %51 : vector<8x128xf32>
    %82 = arith.mulf %66, %74 : vector<8x128xf32>
    %83 = arith.addf %81, %82 : vector<8x128xf32>
    %84 = math.tanh %83 : vector<8x128xf32>
    %85 = arith.mulf %80, %84 : vector<8x128xf32>
    %c0_32 = arith.constant 0 : index
    %c0_33 = arith.constant 0 : index
    %86 = vector.load %arg6[%c0_32, %c0_33] : memref<8x128xf32, #tpu.memory_space<vmem>>, vector<8x128xf32>
    tpu.vector_store %arg6[%c0_32, %c0_33], %85 {strides = array<i32>} : memref<8x128xf32, #tpu.memory_space<vmem>>, vector<8x128xf32>,
    %c0_34 = arith.constant 0 : index
    %c0_35 = arith.constant 0 : index
    %87 = vector.load %arg7[%c0_34, %c0_35] : memref<8x128xf32, #tpu.memory_space<vmem>>, vector<8x128xf32>
    tpu.vector_store %arg7[%c0_34, %c0_35], %83 {strides = array<i32>} : memref<8x128xf32, #tpu.memory_space<vmem>>, vector<8x128xf32>,
    %88 = arith.truncf %85 : vector<8x128xf32> to vector<8x128xbf16>
    %89 = arith.index_cast %49 : i32 to index
    %c0_36 = arith.constant 0 : index
    %c0_37 = arith.constant 0 : index
    %90 = vector.load %arg5[%89, %c0_36, %c0_37] : memref<8x8x128xbf16, #tpu.memory_space<vmem>>, vector<1x8x128xbf16>
    %91 = vector.shape_cast %90 : vector<1x8x128xbf16> to vector<8x128xbf16>
    %92 = vector.shape_cast %88 : vector<8x128xbf16> to vector<1x8x128xbf16>
    tpu.vector_store %arg5[%89, %c0_36, %c0_37], %92 {strides = array<i32>} : memref<8x8x128xbf16, #tpu.memory_space<vmem>>, vector<1x8x128xbf16>,
    %c3_i32 = arith.constant 3 : i32
    %93 = arith.muli %arg1, %c3_i32 : i32
    %c2_i32 = arith.constant 2 : i32
    %94 = arith.addi %c2_i32, %93 : i32
    %c0_38 = arith.constant 0 : index
    %c0_39 = arith.constant 0 : index
    %95 = vector.load %arg6[%c0_38, %c0_39] : memref<8x128xf32, #tpu.memory_space<vmem>>, vector<8x128xf32>
    %c0_40 = arith.constant 0 : index
    %c0_41 = arith.constant 0 : index
    %96 = vector.load %arg7[%c0_40, %c0_41] : memref<8x128xf32, #tpu.memory_space<vmem>>, vector<8x128xf32>
    %97 = arith.index_cast %94 : i32 to index
    %c0_42 = arith.constant 0 : index
    %c0_43 = arith.constant 0 : index
    %98 = vector.load %arg3[%97, %c0_42, %c0_43] : memref<8x8x512xbf16, #tpu.memory_space<vmem>>, vector<1x8x512xbf16>
    %99 = vector.shape_cast %98 : vector<1x8x512xbf16> to vector<8x512xbf16>
    %100 = arith.extf %99 : vector<8x512xbf16> to vector<8x512xf32>
    %101 = arith.truncf %95 : vector<8x128xf32> to vector<8x128xbf16>
    %c0_44 = arith.constant 0 : index
    %c0_45 = arith.constant 0 : index
    %c0_46 = arith.constant 0 : index
    %102 = vector.load %arg4[%c0_44, %c0_45, %c0_46] : memref<1x128x512xbf16, #tpu.memory_space<vmem>>, vector<1x128x512xbf16>
    %103 = vector.shape_cast %102 : vector<1x128x512xbf16> to vector<128x512xbf16>
    %cst_47 = arith.constant dense<0.000000e+00> : vector<8x512xf32>
    %104 = tpu.matmul %101, %103, %cst_47 {dimension_numbers = #tpu.dot_dimension_numbers<[1], [0], [0], [1], [0, 0, 1, 1], [], []>} : vector<8x128xbf16>, vector<128x512xbf16>, vector<8x512xf32> -> vector<8x512xf32>
    %105 = arith.addf %100, %104 : vector<8x512xf32>
    %106 = vector.extract_strided_slice %105 {offsets = [0, 0], sizes = [8, 128], strides = [1, 1]} : vector<8x512xf32> to vector<8x128xf32>
    %107 = arith.negf %106 : vector<8x128xf32>
    %108 = math.exp %107 : vector<8x128xf32>
    %cst_48 = arith.constant 1.000000e+00 : f32
    %109 = vector.broadcast %cst_48 : f32 to vector<8x128xf32>
    %110 = arith.addf %109, %108 : vector<8x128xf32>
    %111 = arith.divf %109, %110 : vector<8x128xf32>
    %112 = vector.extract_strided_slice %105 {offsets = [0, 128], sizes = [8, 128], strides = [1, 1]} : vector<8x512xf32> to vector<8x128xf32>
    %113 = arith.negf %112 : vector<8x128xf32>
    %114 = math.exp %113 : vector<8x128xf32>
    %cst_49 = arith.constant 1.000000e+00 : f32
    %115 = vector.broadcast %cst_49 : f32 to vector<8x128xf32>
    %116 = arith.addf %115, %114 : vector<8x128xf32>
    %117 = arith.divf %115, %116 : vector<8x128xf32>
    %118 = vector.extract_strided_slice %105 {offsets = [0, 256], sizes = [8, 128], strides = [1, 1]} : vector<8x512xf32> to vector<8x128xf32>
    %119 = math.tanh %118 : vector<8x128xf32>
    %120 = vector.extract_strided_slice %105 {offsets = [0, 384], sizes = [8, 128], strides = [1, 1]} : vector<8x512xf32> to vector<8x128xf32>
    %121 = arith.negf %120 : vector<8x128xf32>
    %122 = math.exp %121 : vector<8x128xf32>
    %cst_50 = arith.constant 1.000000e+00 : f32
    %123 = vector.broadcast %cst_50 : f32 to vector<8x128xf32>
    %124 = arith.addf %123, %122 : vector<8x128xf32>
    %125 = arith.divf %123, %124 : vector<8x128xf32>
    %126 = arith.mulf %117, %96 : vector<8x128xf32>
    %127 = arith.mulf %111, %119 : vector<8x128xf32>
    %128 = arith.addf %126, %127 : vector<8x128xf32>
    %129 = math.tanh %128 : vector<8x128xf32>
    %130 = arith.mulf %125, %129 : vector<8x128xf32>
    %c0_51 = arith.constant 0 : index
    %c0_52 = arith.constant 0 : index
    %131 = vector.load %arg6[%c0_51, %c0_52] : memref<8x128xf32, #tpu.memory_space<vmem>>, vector<8x128xf32>
    tpu.vector_store %arg6[%c0_51, %c0_52], %130 {strides = array<i32>} : memref<8x128xf32, #tpu.memory_space<vmem>>, vector<8x128xf32>,
    %c0_53 = arith.constant 0 : index
    %c0_54 = arith.constant 0 : index
    %132 = vector.load %arg7[%c0_53, %c0_54] : memref<8x128xf32, #tpu.memory_space<vmem>>, vector<8x128xf32>
    tpu.vector_store %arg7[%c0_53, %c0_54], %128 {strides = array<i32>} : memref<8x128xf32, #tpu.memory_space<vmem>>, vector<8x128xf32>,
    %133 = arith.truncf %130 : vector<8x128xf32> to vector<8x128xbf16>
    %134 = arith.index_cast %94 : i32 to index
    %c0_55 = arith.constant 0 : index
    %c0_56 = arith.constant 0 : index
    %135 = vector.load %arg5[%134, %c0_55, %c0_56] : memref<8x8x128xbf16, #tpu.memory_space<vmem>>, vector<1x8x128xbf16>
    %136 = vector.shape_cast %135 : vector<1x8x128xbf16> to vector<8x128xbf16>
    %137 = vector.shape_cast %133 : vector<8x128xbf16> to vector<1x8x128xbf16>
    tpu.vector_store %arg5[%134, %c0_55, %c0_56], %137 {strides = array<i32>} : memref<8x8x128xbf16, #tpu.memory_space<vmem>>, vector<1x8x128xbf16>,
    %c1_i32_57 = arith.constant 1 : i32
    %138 = arith.muli %arg1, %c1_i32_57 : i32
    %c3_i32_58 = arith.constant 3 : i32
    %139 = arith.addi %c3_i32_58, %138 : i32
    %c0_59 = arith.constant 0 : index
    %c0_60 = arith.constant 0 : index
    %140 = vector.load %arg6[%c0_59, %c0_60] : memref<8x128xf32, #tpu.memory_space<vmem>>, vector<8x128xf32>
    %c0_61 = arith.constant 0 : index
    %c0_62 = arith.constant 0 : index
    %141 = vector.load %arg7[%c0_61, %c0_62] : memref<8x128xf32, #tpu.memory_space<vmem>>, vector<8x128xf32>
    %142 = arith.index_cast %139 : i32 to index
    %c0_63 = arith.constant 0 : index
    %c0_64 = arith.constant 0 : index
    %143 = vector.load %arg3[%142, %c0_63, %c0_64] : memref<8x8x512xbf16, #tpu.memory_space<vmem>>, vector<1x8x512xbf16>
    %144 = vector.shape_cast %143 : vector<1x8x512xbf16> to vector<8x512xbf16>
    %145 = arith.extf %144 : vector<8x512xbf16> to vector<8x512xf32>
    %146 = arith.truncf %140 : vector<8x128xf32> to vector<8x128xbf16>
    %c0_65 = arith.constant 0 : index
    %c0_66 = arith.constant 0 : index
    %c0_67 = arith.constant 0 : index
    %147 = vector.load %arg4[%c0_65, %c0_66, %c0_67] : memref<1x128x512xbf16, #tpu.memory_space<vmem>>, vector<1x128x512xbf16>
    %148 = vector.shape_cast %147 : vector<1x128x512xbf16> to vector<128x512xbf16>
    %cst_68 = arith.constant dense<0.000000e+00> : vector<8x512xf32>
    %149 = tpu.matmul %146, %148, %cst_68 {dimension_numbers = #tpu.dot_dimension_numbers<[1], [0], [0], [1], [0, 0, 1, 1], [], []>} : vector<8x128xbf16>, vector<128x512xbf16>, vector<8x512xf32> -> vector<8x512xf32>
    %150 = arith.addf %145, %149 : vector<8x512xf32>
    %151 = vector.extract_strided_slice %150 {offsets = [0, 0], sizes = [8, 128], strides = [1, 1]} : vector<8x512xf32> to vector<8x128xf32>
    %152 = arith.negf %151 : vector<8x128xf32>
    %153 = math.exp %152 : vector<8x128xf32>
    %cst_69 = arith.constant 1.000000e+00 : f32
    %154 = vector.broadcast %cst_69 : f32 to vector<8x128xf32>
    %155 = arith.addf %154, %153 : vector<8x128xf32>
    %156 = arith.divf %154, %155 : vector<8x128xf32>
    %157 = vector.extract_strided_slice %150 {offsets = [0, 128], sizes = [8, 128], strides = [1, 1]} : vector<8x512xf32> to vector<8x128xf32>
    %158 = arith.negf %157 : vector<8x128xf32>
    %159 = math.exp %158 : vector<8x128xf32>
    %cst_70 = arith.constant 1.000000e+00 : f32
    %160 = vector.broadcast %cst_70 : f32 to vector<8x128xf32>
    %161 = arith.addf %160, %159 : vector<8x128xf32>
    %162 = arith.divf %160, %161 : vector<8x128xf32>
    %163 = vector.extract_strided_slice %150 {offsets = [0, 256], sizes = [8, 128], strides = [1, 1]} : vector<8x512xf32> to vector<8x128xf32>
    %164 = math.tanh %163 : vector<8x128xf32>
    %165 = vector.extract_strided_slice %150 {offsets = [0, 384], sizes = [8, 128], strides = [1, 1]} : vector<8x512xf32> to vector<8x128xf32>
    %166 = arith.negf %165 : vector<8x128xf32>
    %167 = math.exp %166 : vector<8x128xf32>
    %cst_71 = arith.constant 1.000000e+00 : f32
    %168 = vector.broadcast %cst_71 : f32 to vector<8x128xf32>
    %169 = arith.addf %168, %167 : vector<8x128xf32>
    %170 = arith.divf %168, %169 : vector<8x128xf32>
    %171 = arith.mulf %162, %141 : vector<8x128xf32>
    %172 = arith.mulf %156, %164 : vector<8x128xf32>
    %173 = arith.addf %171, %172 : vector<8x128xf32>
    %174 = math.tanh %173 : vector<8x128xf32>
    %175 = arith.mulf %170, %174 : vector<8x128xf32>
    %c0_72 = arith.constant 0 : index
    %c0_73 = arith.constant 0 : index
    %176 = vector.load %arg6[%c0_72, %c0_73] : memref<8x128xf32, #tpu.memory_space<vmem>>, vector<8x128xf32>
    tpu.vector_store %arg6[%c0_72, %c0_73], %175 {strides = array<i32>} : memref<8x128xf32, #tpu.memory_space<vmem>>, vector<8x128xf32>,
    %c0_74 = arith.constant 0 : index
    %c0_75 = arith.constant 0 : index
    %177 = vector.load %arg7[%c0_74, %c0_75] : memref<8x128xf32, #tpu.memory_space<vmem>>, vector<8x128xf32>
    tpu.vector_store %arg7[%c0_74, %c0_75], %173 {strides = array<i32>} : memref<8x128xf32, #tpu.memory_space<vmem>>, vector<8x128xf32>,
    %178 = arith.truncf %175 : vector<8x128xf32> to vector<8x128xbf16>
    %179 = arith.index_cast %139 : i32 to index
    %c0_76 = arith.constant 0 : index
    %c0_77 = arith.constant 0 : index
    %180 = vector.load %arg5[%179, %c0_76, %c0_77] : memref<8x8x128xbf16, #tpu.memory_space<vmem>>, vector<1x8x128xbf16>
    %181 = vector.shape_cast %180 : vector<1x8x128xbf16> to vector<8x128xbf16>
    %182 = vector.shape_cast %178 : vector<8x128xbf16> to vector<1x8x128xbf16>
    tpu.vector_store %arg5[%179, %c0_76, %c0_77], %182 {strides = array<i32>} : memref<8x8x128xbf16, #tpu.memory_space<vmem>>, vector<1x8x128xbf16>,
    %c-1_i32 = arith.constant -1 : i32
    %183 = arith.muli %arg1, %c-1_i32 : i32
    %c4_i32 = arith.constant 4 : i32
    %184 = arith.addi %c4_i32, %183 : i32
    %c0_78 = arith.constant 0 : index
    %c0_79 = arith.constant 0 : index
    %185 = vector.load %arg6[%c0_78, %c0_79] : memref<8x128xf32, #tpu.memory_space<vmem>>, vector<8x128xf32>
    %c0_80 = arith.constant 0 : index
    %c0_81 = arith.constant 0 : index
    %186 = vector.load %arg7[%c0_80, %c0_81] : memref<8x128xf32, #tpu.memory_space<vmem>>, vector<8x128xf32>
    %187 = arith.index_cast %184 : i32 to index
    %c0_82 = arith.constant 0 : index
    %c0_83 = arith.constant 0 : index
    %188 = vector.load %arg3[%187, %c0_82, %c0_83] : memref<8x8x512xbf16, #tpu.memory_space<vmem>>, vector<1x8x512xbf16>
    %189 = vector.shape_cast %188 : vector<1x8x512xbf16> to vector<8x512xbf16>
    %190 = arith.extf %189 : vector<8x512xbf16> to vector<8x512xf32>
    %191 = arith.truncf %185 : vector<8x128xf32> to vector<8x128xbf16>
    %c0_84 = arith.constant 0 : index
    %c0_85 = arith.constant 0 : index
    %c0_86 = arith.constant 0 : index
    %192 = vector.load %arg4[%c0_84, %c0_85, %c0_86] : memref<1x128x512xbf16, #tpu.memory_space<vmem>>, vector<1x128x512xbf16>
    %193 = vector.shape_cast %192 : vector<1x128x512xbf16> to vector<128x512xbf16>
    %cst_87 = arith.constant dense<0.000000e+00> : vector<8x512xf32>
    %194 = tpu.matmul %191, %193, %cst_87 {dimension_numbers = #tpu.dot_dimension_numbers<[1], [0], [0], [1], [0, 0, 1, 1], [], []>} : vector<8x128xbf16>, vector<128x512xbf16>, vector<8x512xf32> -> vector<8x512xf32>
    %195 = arith.addf %190, %194 : vector<8x512xf32>
    %196 = vector.extract_strided_slice %195 {offsets = [0, 0], sizes = [8, 128], strides = [1, 1]} : vector<8x512xf32> to vector<8x128xf32>
    %197 = arith.negf %196 : vector<8x128xf32>
    %198 = math.exp %197 : vector<8x128xf32>
    %cst_88 = arith.constant 1.000000e+00 : f32
    %199 = vector.broadcast %cst_88 : f32 to vector<8x128xf32>
    %200 = arith.addf %199, %198 : vector<8x128xf32>
    %201 = arith.divf %199, %200 : vector<8x128xf32>
    %202 = vector.extract_strided_slice %195 {offsets = [0, 128], sizes = [8, 128], strides = [1, 1]} : vector<8x512xf32> to vector<8x128xf32>
    %203 = arith.negf %202 : vector<8x128xf32>
    %204 = math.exp %203 : vector<8x128xf32>
    %cst_89 = arith.constant 1.000000e+00 : f32
    %205 = vector.broadcast %cst_89 : f32 to vector<8x128xf32>
    %206 = arith.addf %205, %204 : vector<8x128xf32>
    %207 = arith.divf %205, %206 : vector<8x128xf32>
    %208 = vector.extract_strided_slice %195 {offsets = [0, 256], sizes = [8, 128], strides = [1, 1]} : vector<8x512xf32> to vector<8x128xf32>
    %209 = math.tanh %208 : vector<8x128xf32>
    %210 = vector.extract_strided_slice %195 {offsets = [0, 384], sizes = [8, 128], strides = [1, 1]} : vector<8x512xf32> to vector<8x128xf32>
    %211 = arith.negf %210 : vector<8x128xf32>
    %212 = math.exp %211 : vector<8x128xf32>
    %cst_90 = arith.constant 1.000000e+00 : f32
    %213 = vector.broadcast %cst_90 : f32 to vector<8x128xf32>
    %214 = arith.addf %213, %212 : vector<8x128xf32>
    %215 = arith.divf %213, %214 : vector<8x128xf32>
    %216 = arith.mulf %207, %186 : vector<8x128xf32>
    %217 = arith.mulf %201, %209 : vector<8x128xf32>
    %218 = arith.addf %216, %217 : vector<8x128xf32>
    %219 = math.tanh %218 : vector<8x128xf32>
    %220 = arith.mulf %215, %219 : vector<8x128xf32>
    %c0_91 = arith.constant 0 : index
    %c0_92 = arith.constant 0 : index
    %221 = vector.load %arg6[%c0_91, %c0_92] : memref<8x128xf32, #tpu.memory_space<vmem>>, vector<8x128xf32>
    tpu.vector_store %arg6[%c0_91, %c0_92], %220 {strides = array<i32>} : memref<8x128xf32, #tpu.memory_space<vmem>>, vector<8x128xf32>,
    %c0_93 = arith.constant 0 : index
    %c0_94 = arith.constant 0 : index
    %222 = vector.load %arg7[%c0_93, %c0_94] : memref<8x128xf32, #tpu.memory_space<vmem>>, vector<8x128xf32>
    tpu.vector_store %arg7[%c0_93, %c0_94], %218 {strides = array<i32>} : memref<8x128xf32, #tpu.memory_space<vmem>>, vector<8x128xf32>,
    %223 = arith.truncf %220 : vector<8x128xf32> to vector<8x128xbf16>
    %224 = arith.index_cast %184 : i32 to index
    %c0_95 = arith.constant 0 : index
    %c0_96 = arith.constant 0 : index
    %225 = vector.load %arg5[%224, %c0_95, %c0_96] : memref<8x8x128xbf16, #tpu.memory_space<vmem>>, vector<1x8x128xbf16>
    %226 = vector.shape_cast %225 : vector<1x8x128xbf16> to vector<8x128xbf16>
    %227 = vector.shape_cast %223 : vector<8x128xbf16> to vector<1x8x128xbf16>
    tpu.vector_store %arg5[%224, %c0_95, %c0_96], %227 {strides = array<i32>} : memref<8x8x128xbf16, #tpu.memory_space<vmem>>, vector<1x8x128xbf16>,
    %c-3_i32 = arith.constant -3 : i32
    %228 = arith.muli %arg1, %c-3_i32 : i32
    %c5_i32_97 = arith.constant 5 : i32
    %229 = arith.addi %c5_i32_97, %228 : i32
    %c0_98 = arith.constant 0 : index
    %c0_99 = arith.constant 0 : index
    %230 = vector.load %arg6[%c0_98, %c0_99] : memref<8x128xf32, #tpu.memory_space<vmem>>, vector<8x128xf32>
    %c0_100 = arith.constant 0 : index
    %c0_101 = arith.constant 0 : index
    %231 = vector.load %arg7[%c0_100, %c0_101] : memref<8x128xf32, #tpu.memory_space<vmem>>, vector<8x128xf32>
    %232 = arith.index_cast %229 : i32 to index
    %c0_102 = arith.constant 0 : index
    %c0_103 = arith.constant 0 : index
    %233 = vector.load %arg3[%232, %c0_102, %c0_103] : memref<8x8x512xbf16, #tpu.memory_space<vmem>>, vector<1x8x512xbf16>
    %234 = vector.shape_cast %233 : vector<1x8x512xbf16> to vector<8x512xbf16>
    %235 = arith.extf %234 : vector<8x512xbf16> to vector<8x512xf32>
    %236 = arith.truncf %230 : vector<8x128xf32> to vector<8x128xbf16>
    %c0_104 = arith.constant 0 : index
    %c0_105 = arith.constant 0 : index
    %c0_106 = arith.constant 0 : index
    %237 = vector.load %arg4[%c0_104, %c0_105, %c0_106] : memref<1x128x512xbf16, #tpu.memory_space<vmem>>, vector<1x128x512xbf16>
    %238 = vector.shape_cast %237 : vector<1x128x512xbf16> to vector<128x512xbf16>
    %cst_107 = arith.constant dense<0.000000e+00> : vector<8x512xf32>
    %239 = tpu.matmul %236, %238, %cst_107 {dimension_numbers = #tpu.dot_dimension_numbers<[1], [0], [0], [1], [0, 0, 1, 1], [], []>} : vector<8x128xbf16>, vector<128x512xbf16>, vector<8x512xf32> -> vector<8x512xf32>
    %240 = arith.addf %235, %239 : vector<8x512xf32>
    %241 = vector.extract_strided_slice %240 {offsets = [0, 0], sizes = [8, 128], strides = [1, 1]} : vector<8x512xf32> to vector<8x128xf32>
    %242 = arith.negf %241 : vector<8x128xf32>
    %243 = math.exp %242 : vector<8x128xf32>
    %cst_108 = arith.constant 1.000000e+00 : f32
    %244 = vector.broadcast %cst_108 : f32 to vector<8x128xf32>
    %245 = arith.addf %244, %243 : vector<8x128xf32>
    %246 = arith.divf %244, %245 : vector<8x128xf32>
    %247 = vector.extract_strided_slice %240 {offsets = [0, 128], sizes = [8, 128], strides = [1, 1]} : vector<8x512xf32> to vector<8x128xf32>
    %248 = arith.negf %247 : vector<8x128xf32>
    %249 = math.exp %248 : vector<8x128xf32>
    %cst_109 = arith.constant 1.000000e+00 : f32
    %250 = vector.broadcast %cst_109 : f32 to vector<8x128xf32>
    %251 = arith.addf %250, %249 : vector<8x128xf32>
    %252 = arith.divf %250, %251 : vector<8x128xf32>
    %253 = vector.extract_strided_slice %240 {offsets = [0, 256], sizes = [8, 128], strides = [1, 1]} : vector<8x512xf32> to vector<8x128xf32>
    %254 = math.tanh %253 : vector<8x128xf32>
    %255 = vector.extract_strided_slice %240 {offsets = [0, 384], sizes = [8, 128], strides = [1, 1]} : vector<8x512xf32> to vector<8x128xf32>
    %256 = arith.negf %255 : vector<8x128xf32>
    %257 = math.exp %256 : vector<8x128xf32>
    %cst_110 = arith.constant 1.000000e+00 : f32
    %258 = vector.broadcast %cst_110 : f32 to vector<8x128xf32>
    %259 = arith.addf %258, %257 : vector<8x128xf32>
    %260 = arith.divf %258, %259 : vector<8x128xf32>
    %261 = arith.mulf %252, %231 : vector<8x128xf32>
    %262 = arith.mulf %246, %254 : vector<8x128xf32>
    %263 = arith.addf %261, %262 : vector<8x128xf32>
    %264 = math.tanh %263 : vector<8x128xf32>
    %265 = arith.mulf %260, %264 : vector<8x128xf32>
    %c0_111 = arith.constant 0 : index
    %c0_112 = arith.constant 0 : index
    %266 = vector.load %arg6[%c0_111, %c0_112] : memref<8x128xf32, #tpu.memory_space<vmem>>, vector<8x128xf32>
    tpu.vector_store %arg6[%c0_111, %c0_112], %265 {strides = array<i32>} : memref<8x128xf32, #tpu.memory_space<vmem>>, vector<8x128xf32>,
    %c0_113 = arith.constant 0 : index
    %c0_114 = arith.constant 0 : index
    %267 = vector.load %arg7[%c0_113, %c0_114] : memref<8x128xf32, #tpu.memory_space<vmem>>, vector<8x128xf32>
    tpu.vector_store %arg7[%c0_113, %c0_114], %263 {strides = array<i32>} : memref<8x128xf32, #tpu.memory_space<vmem>>, vector<8x128xf32>,
    %268 = arith.truncf %265 : vector<8x128xf32> to vector<8x128xbf16>
    %269 = arith.index_cast %229 : i32 to index
    %c0_115 = arith.constant 0 : index
    %c0_116 = arith.constant 0 : index
    %270 = vector.load %arg5[%269, %c0_115, %c0_116] : memref<8x8x128xbf16, #tpu.memory_space<vmem>>, vector<1x8x128xbf16>
    %271 = vector.shape_cast %270 : vector<1x8x128xbf16> to vector<8x128xbf16>
    %272 = vector.shape_cast %268 : vector<8x128xbf16> to vector<1x8x128xbf16>
    tpu.vector_store %arg5[%269, %c0_115, %c0_116], %272 {strides = array<i32>} : memref<8x8x128xbf16, #tpu.memory_space<vmem>>, vector<1x8x128xbf16>,
    %c-5_i32 = arith.constant -5 : i32
    %273 = arith.muli %arg1, %c-5_i32 : i32
    %c6_i32 = arith.constant 6 : i32
    %274 = arith.addi %c6_i32, %273 : i32
    %c0_117 = arith.constant 0 : index
    %c0_118 = arith.constant 0 : index
    %275 = vector.load %arg6[%c0_117, %c0_118] : memref<8x128xf32, #tpu.memory_space<vmem>>, vector<8x128xf32>
    %c0_119 = arith.constant 0 : index
    %c0_120 = arith.constant 0 : index
    %276 = vector.load %arg7[%c0_119, %c0_120] : memref<8x128xf32, #tpu.memory_space<vmem>>, vector<8x128xf32>
    %277 = arith.index_cast %274 : i32 to index
    %c0_121 = arith.constant 0 : index
    %c0_122 = arith.constant 0 : index
    %278 = vector.load %arg3[%277, %c0_121, %c0_122] : memref<8x8x512xbf16, #tpu.memory_space<vmem>>, vector<1x8x512xbf16>
    %279 = vector.shape_cast %278 : vector<1x8x512xbf16> to vector<8x512xbf16>
    %280 = arith.extf %279 : vector<8x512xbf16> to vector<8x512xf32>
    %281 = arith.truncf %275 : vector<8x128xf32> to vector<8x128xbf16>
    %c0_123 = arith.constant 0 : index
    %c0_124 = arith.constant 0 : index
    %c0_125 = arith.constant 0 : index
    %282 = vector.load %arg4[%c0_123, %c0_124, %c0_125] : memref<1x128x512xbf16, #tpu.memory_space<vmem>>, vector<1x128x512xbf16>
    %283 = vector.shape_cast %282 : vector<1x128x512xbf16> to vector<128x512xbf16>
    %cst_126 = arith.constant dense<0.000000e+00> : vector<8x512xf32>
    %284 = tpu.matmul %281, %283, %cst_126 {dimension_numbers = #tpu.dot_dimension_numbers<[1], [0], [0], [1], [0, 0, 1, 1], [], []>} : vector<8x128xbf16>, vector<128x512xbf16>, vector<8x512xf32> -> vector<8x512xf32>
    %285 = arith.addf %280, %284 : vector<8x512xf32>
    %286 = vector.extract_strided_slice %285 {offsets = [0, 0], sizes = [8, 128], strides = [1, 1]} : vector<8x512xf32> to vector<8x128xf32>
    %287 = arith.negf %286 : vector<8x128xf32>
    %288 = math.exp %287 : vector<8x128xf32>
    %cst_127 = arith.constant 1.000000e+00 : f32
    %289 = vector.broadcast %cst_127 : f32 to vector<8x128xf32>
    %290 = arith.addf %289, %288 : vector<8x128xf32>
    %291 = arith.divf %289, %290 : vector<8x128xf32>
    %292 = vector.extract_strided_slice %285 {offsets = [0, 128], sizes = [8, 128], strides = [1, 1]} : vector<8x512xf32> to vector<8x128xf32>
    %293 = arith.negf %292 : vector<8x128xf32>
    %294 = math.exp %293 : vector<8x128xf32>
    %cst_128 = arith.constant 1.000000e+00 : f32
    %295 = vector.broadcast %cst_128 : f32 to vector<8x128xf32>
    %296 = arith.addf %295, %294 : vector<8x128xf32>
    %297 = arith.divf %295, %296 : vector<8x128xf32>
    %298 = vector.extract_strided_slice %285 {offsets = [0, 256], sizes = [8, 128], strides = [1, 1]} : vector<8x512xf32> to vector<8x128xf32>
    %299 = math.tanh %298 : vector<8x128xf32>
    %300 = vector.extract_strided_slice %285 {offsets = [0, 384], sizes = [8, 128], strides = [1, 1]} : vector<8x512xf32> to vector<8x128xf32>
    %301 = arith.negf %300 : vector<8x128xf32>
    %302 = math.exp %301 : vector<8x128xf32>
    %cst_129 = arith.constant 1.000000e+00 : f32
    %303 = vector.broadcast %cst_129 : f32 to vector<8x128xf32>
    %304 = arith.addf %303, %302 : vector<8x128xf32>
    %305 = arith.divf %303, %304 : vector<8x128xf32>
    %306 = arith.mulf %297, %276 : vector<8x128xf32>
    %307 = arith.mulf %291, %299 : vector<8x128xf32>
    %308 = arith.addf %306, %307 : vector<8x128xf32>
    %309 = math.tanh %308 : vector<8x128xf32>
    %310 = arith.mulf %305, %309 : vector<8x128xf32>
    %c0_130 = arith.constant 0 : index
    %c0_131 = arith.constant 0 : index
    %311 = vector.load %arg6[%c0_130, %c0_131] : memref<8x128xf32, #tpu.memory_space<vmem>>, vector<8x128xf32>
    tpu.vector_store %arg6[%c0_130, %c0_131], %310 {strides = array<i32>} : memref<8x128xf32, #tpu.memory_space<vmem>>, vector<8x128xf32>,
    %c0_132 = arith.constant 0 : index
    %c0_133 = arith.constant 0 : index
    %312 = vector.load %arg7[%c0_132, %c0_133] : memref<8x128xf32, #tpu.memory_space<vmem>>, vector<8x128xf32>
    tpu.vector_store %arg7[%c0_132, %c0_133], %308 {strides = array<i32>} : memref<8x128xf32, #tpu.memory_space<vmem>>, vector<8x128xf32>,
    %313 = arith.truncf %310 : vector<8x128xf32> to vector<8x128xbf16>
    %314 = arith.index_cast %274 : i32 to index
    %c0_134 = arith.constant 0 : index
    %c0_135 = arith.constant 0 : index
    %315 = vector.load %arg5[%314, %c0_134, %c0_135] : memref<8x8x128xbf16, #tpu.memory_space<vmem>>, vector<1x8x128xbf16>
    %316 = vector.shape_cast %315 : vector<1x8x128xbf16> to vector<8x128xbf16>
    %317 = vector.shape_cast %313 : vector<8x128xbf16> to vector<1x8x128xbf16>
    tpu.vector_store %arg5[%314, %c0_134, %c0_135], %317 {strides = array<i32>} : memref<8x8x128xbf16, #tpu.memory_space<vmem>>, vector<1x8x128xbf16>,
    %c-7_i32 = arith.constant -7 : i32
    %318 = arith.muli %arg1, %c-7_i32 : i32
    %c7_i32_136 = arith.constant 7 : i32
    %319 = arith.addi %c7_i32_136, %318 : i32
    %c0_137 = arith.constant 0 : index
    %c0_138 = arith.constant 0 : index
    %320 = vector.load %arg6[%c0_137, %c0_138] : memref<8x128xf32, #tpu.memory_space<vmem>>, vector<8x128xf32>
    %c0_139 = arith.constant 0 : index
    %c0_140 = arith.constant 0 : index
    %321 = vector.load %arg7[%c0_139, %c0_140] : memref<8x128xf32, #tpu.memory_space<vmem>>, vector<8x128xf32>
    %322 = arith.index_cast %319 : i32 to index
    %c0_141 = arith.constant 0 : index
    %c0_142 = arith.constant 0 : index
    %323 = vector.load %arg3[%322, %c0_141, %c0_142] : memref<8x8x512xbf16, #tpu.memory_space<vmem>>, vector<1x8x512xbf16>
    %324 = vector.shape_cast %323 : vector<1x8x512xbf16> to vector<8x512xbf16>
    %325 = arith.extf %324 : vector<8x512xbf16> to vector<8x512xf32>
    %326 = arith.truncf %320 : vector<8x128xf32> to vector<8x128xbf16>
    %c0_143 = arith.constant 0 : index
    %c0_144 = arith.constant 0 : index
    %c0_145 = arith.constant 0 : index
    %327 = vector.load %arg4[%c0_143, %c0_144, %c0_145] : memref<1x128x512xbf16, #tpu.memory_space<vmem>>, vector<1x128x512xbf16>
    %328 = vector.shape_cast %327 : vector<1x128x512xbf16> to vector<128x512xbf16>
    %cst_146 = arith.constant dense<0.000000e+00> : vector<8x512xf32>
    %329 = tpu.matmul %326, %328, %cst_146 {dimension_numbers = #tpu.dot_dimension_numbers<[1], [0], [0], [1], [0, 0, 1, 1], [], []>} : vector<8x128xbf16>, vector<128x512xbf16>, vector<8x512xf32> -> vector<8x512xf32>
    %330 = arith.addf %325, %329 : vector<8x512xf32>
    %331 = vector.extract_strided_slice %330 {offsets = [0, 0], sizes = [8, 128], strides = [1, 1]} : vector<8x512xf32> to vector<8x128xf32>
    %332 = arith.negf %331 : vector<8x128xf32>
    %333 = math.exp %332 : vector<8x128xf32>
    %cst_147 = arith.constant 1.000000e+00 : f32
    %334 = vector.broadcast %cst_147 : f32 to vector<8x128xf32>
    %335 = arith.addf %334, %333 : vector<8x128xf32>
    %336 = arith.divf %334, %335 : vector<8x128xf32>
    %337 = vector.extract_strided_slice %330 {offsets = [0, 128], sizes = [8, 128], strides = [1, 1]} : vector<8x512xf32> to vector<8x128xf32>
    %338 = arith.negf %337 : vector<8x128xf32>
    %339 = math.exp %338 : vector<8x128xf32>
    %cst_148 = arith.constant 1.000000e+00 : f32
    %340 = vector.broadcast %cst_148 : f32 to vector<8x128xf32>
    %341 = arith.addf %340, %339 : vector<8x128xf32>
    %342 = arith.divf %340, %341 : vector<8x128xf32>
    %343 = vector.extract_strided_slice %330 {offsets = [0, 256], sizes = [8, 128], strides = [1, 1]} : vector<8x512xf32> to vector<8x128xf32>
    %344 = math.tanh %343 : vector<8x128xf32>
    %345 = vector.extract_strided_slice %330 {offsets = [0, 384], sizes = [8, 128], strides = [1, 1]} : vector<8x512xf32> to vector<8x128xf32>
    %346 = arith.negf %345 : vector<8x128xf32>
    %347 = math.exp %346 : vector<8x128xf32>
    %cst_149 = arith.constant 1.000000e+00 : f32
    %348 = vector.broadcast %cst_149 : f32 to vector<8x128xf32>
    %349 = arith.addf %348, %347 : vector<8x128xf32>
    %350 = arith.divf %348, %349 : vector<8x128xf32>
    %351 = arith.mulf %342, %321 : vector<8x128xf32>
    %352 = arith.mulf %336, %344 : vector<8x128xf32>
    %353 = arith.addf %351, %352 : vector<8x128xf32>
    %354 = math.tanh %353 : vector<8x128xf32>
    %355 = arith.mulf %350, %354 : vector<8x128xf32>
    %c0_150 = arith.constant 0 : index
    %c0_151 = arith.constant 0 : index
    %356 = vector.load %arg6[%c0_150, %c0_151] : memref<8x128xf32, #tpu.memory_space<vmem>>, vector<8x128xf32>
    tpu.vector_store %arg6[%c0_150, %c0_151], %355 {strides = array<i32>} : memref<8x128xf32, #tpu.memory_space<vmem>>, vector<8x128xf32>,
    %c0_152 = arith.constant 0 : index
    %c0_153 = arith.constant 0 : index
    %357 = vector.load %arg7[%c0_152, %c0_153] : memref<8x128xf32, #tpu.memory_space<vmem>>, vector<8x128xf32>
    tpu.vector_store %arg7[%c0_152, %c0_153], %353 {strides = array<i32>} : memref<8x128xf32, #tpu.memory_space<vmem>>, vector<8x128xf32>,
    %358 = arith.truncf %355 : vector<8x128xf32> to vector<8x128xbf16>
    %359 = arith.index_cast %319 : i32 to index
    %c0_154 = arith.constant 0 : index
    %c0_155 = arith.constant 0 : index
    %360 = vector.load %arg5[%359, %c0_154, %c0_155] : memref<8x8x128xbf16, #tpu.memory_space<vmem>>, vector<1x8x128xbf16>
    %361 = vector.shape_cast %360 : vector<1x8x128xbf16> to vector<8x128xbf16>
    %362 = vector.shape_cast %358 : vector<8x128xbf16> to vector<1x8x128xbf16>
    tpu.vector_store %arg5[%359, %c0_154, %c0_155], %362 {strides = array<i32>} : memref<8x8x128xbf16, #tpu.memory_space<vmem>>, vector<1x8x128xbf16>,
    return
  }
  func.func @transform_0(%arg0: i32, %arg1: i32, %arg2: i32) -> (i32, i32, i32) {
    %c2_i32 = arith.constant 2 : i32
    %0 = arith.muli %c2_i32, %arg2 : i32
    %c0_i32 = arith.constant 0 : i32
    %1 = arith.subi %c0_i32, %0 : i32
    %2 = arith.muli %arg1, %1 : i32
    %3 = arith.addi %arg2, %2 : i32
    %c0_i32_0 = arith.constant 0 : i32
    return %3, %arg0, %arg1 : i32, i32, i32
  }
  func.func @transform_1(%arg0: i32, %arg1: i32, %arg2: i32) -> (i32, i32, i32) {
    %c0_i32 = arith.constant 0 : i32
    %c0_i32_0 = arith.constant 0 : i32
    %c0_i32_1 = arith.constant 0 : i32
    return %arg1, %c0_i32, %c0_i32_0 : i32, i32, i32
  }
  func.func @transform_2(%arg0: i32, %arg1: i32, %arg2: i32) -> (i32, i32, i32) {
    %c2_i32 = arith.constant 2 : i32
    %0 = arith.muli %c2_i32, %arg2 : i32
    %c0_i32 = arith.constant 0 : i32
    %1 = arith.subi %c0_i32, %0 : i32
    %2 = arith.muli %arg1, %1 : i32
    %3 = arith.addi %arg2, %2 : i32
    %c0_i32_0 = arith.constant 0 : i32
    return %3, %arg0, %arg1 : i32, i32, i32
  }
}

</mosaic_0001>

<bundles_post_ra>
// kernel: tpu_custom_call.1
= control target key start
LH: loop header
LB: loop body
LE: loop exit
PB: predicated region body
PF: predicated region fallthrough
CT: control target
= control target key end

     0   :  { %s4555_s0 = inlined_call_operand.hbm [shape: bf16[8,8,1024], index: 0, kind: input, shape index: {}]   ;;  %s4556_s1 = inlined_call_operand.hbm [shape: bf16[2,128,512], index: 1, kind: input, shape index: {}]   ;;  %s4557_s2 = inlined_call_operand.hbm [shape: bf16[8,8,256], index: 2, kind: output, shape index: {}]  }
   0x1   :  { %4558 = sst [smem:[#allocation13_spill]] %s4555_s0 }
   0x2   :  { %7 = vsyncpa [#allocation5], 0 }
   0x3   :  { %9 = vsyncpa [#allocation5 + $0x1], 0 }
   0x4   :  { %10 = vsyncpa [#allocation8], 0 }
   0x5   :  { %12 = vsyncpa [#allocation8 + $0x1], 0 }
   0x6   :  { %13 = vsyncpa [#allocation6], 0 }
   0x7   :  { %15 = vsyncpa [#allocation6 + $0x1], 0  ;;  %s3845_s9 = smov 0   ;;  %s3847_s10 = smov 0  }
   0x8   :  { %s3849_s11 = smov 0   ;;  %s3851_s12 = smov 0  }
   0x9   :  { %s3853_s13 = smov 0   ;;  %s3855_s14 = smov 0  }
   0xa LB: > { %s3039_s15 = sadd.s32 4294967295, %s3817_s14   ;;  %s3040_s16 = sadd.s32 4294967294, %s3817_s14   ;;  %s3817_s14 = sphi %s3855_s14, %s21_s14   ;;  %s3813_s13 = sphi %s3853_s13, %s4570_s13   ;;  %s3809_s12 = sphi %s3851_s12, %s4569_s12   ;;  %s3805_s11 = sphi %s3849_s11, %s4568_s11   ;;  %s3801_s10 = sphi %s3847_s10, %s4567_s10   ;;  %s3797_s9 = sphi %s3845_s9, %s4566_s9  }
   0xb   : > { %s36_s17 = sadd.s32 1, %s3813_s13  ;;  %s59_s18 = sadd.s32 1, %s3805_s11 }
   0xc   : > { %p38_p0 = scmp.ge.s32.totalorder %s36_s17, 2  ;;  %p66_p1 = scmp.ne.s32.totalorder %s3805_s11, %s3801_s10 }
   0xd   : > { %p67_p2 = scmp.eq.s32.totalorder %s3817_s14, 0  ;;  %p72_p3 = scmp.ne.s32.totalorder %s3801_s10, %s3797_s9 }
   0xe   : > { %s4572_s17 = smov (%p38_p0, %s36_s17), 0  ;;  %p73_p5 = scmp.eq.s32.totalorder %s3039_s15, 0 }
   0xf   : > { %p3886_p4 = por %p67_p2, %p66_p1  ;;  %s55_s20 = ssub.s32 %s3813_s13, %s4572_s17 }
  0x10   : > { %p134_p6 = scmp.eq.s32.totalorder %s3039_s15, 1  ;;  %p57_p7 = scmp.eq.s32.totalorder %s55_s20, 0 }
  0x11   : > { %p3892_p8 = por %p73_p5, %p72_p3  ;;  %p140_p10 = scmp.eq.s32.totalorder %s3040_s16, 1 }
  0x12   : > { %p3896_p9 = por %p134_p6, %p66_p1  ;;  %p3042_p12 = scmp.ge.s32.totalorder %s3817_s14, 2 }
  0x13   : > { %s3901_s23 = scalar_select %p57_p7, %s3805_s11, %s59_s18  }
  0x14   : > { %p3903_p11 = por %p140_p10, %p72_p3  ;;  %p3395_p13 = scmp.lt.s32.totalorder %s3817_s14, 2 }
  0x15   : > { %s3910_s25 = sand.u32 1, %s3805_s11   ;;  %s3373_s27 = sshll.u32 %s3813_s13, 8 }
  0x16   : > { %s3043_s26 = sshll.u32 %s3910_s25, 7  ;;  %s4563_s0 = sld [smem:[#allocation13_spill]] }
  0x17   : > { %s164_s3 = scalar_lea.vmem [#allocation4], %s3043_s26  ;;  %p3919_p0 = pnand %p3395_p13, %p3886_p4 }
  0x18   : > { %s180_s4 = sshll.u32 %s164_s3, 4  ;;  %s161_s6 = scalar_lea.sflag [#allocation5], %s3910_s25  ;;  %s181_s4 = int_to_ptr.vmem [resolvable:$true] %s180_s4 }
  0x19   : > { %p3679_p1 = pneg %p3919_p0  ;;  %s3690_s7 = scalar_lea.vmem %s181_s4, 2048 }
  0x1a   : > { %p3691_p2 = scmp.ne.s32.totalorder %s181_s4, %s3690_s7  ;;  %s3819_s8 = smov [#allocation4]  }
  0x1b   : > { %s3695_s15 = sshll.u32 %s3819_s8, 4  ;;  %s3696_s15 = int_to_ptr.vmem [resolvable:$false] %s3695_s15 }
  0x1c   : > { %s179_s30 = scalar_lea.hbm %s4563_s0, %s3373_s27  ;;  %p3693_p3 = pnand %p3691_p2, %p3679_p1 }
  0x1d   : > { %s3697_s16 = scalar_lea.vmem %s3696_s15, 4096  ;;  %p3698_p6 = scmp.lt.s32.totalorder %s181_s4, %s3696_s15 }
  0x1e   : > { %p3694_p5 = pneg %p3693_p3  ;;  %p3699_p4 = scmp.lt.s32.totalorder %s3697_s16, %s3690_s7 }
  0x20   : > { %p3700_p7 = por %p3699_p4, %p3698_p6 }
  0x22   : > { %p3701_p10 = pnand %p3700_p7, %p3694_p5 }
  0x24   : > { %3704 = shalt.err (!%p3701_p10)
}
  0x25   : > { %s3820_s18 = smov 512   ;;  %s3821_s19 = smov 256  }
  0x26   : > { %s3822_s20 = smov 16   ;;  %p3049_p13 = scmp.ge.s32.totalorder %s3817_s14, 1 }
  0x27   : > { %3387 = dma.hbm_to_vmem [thread:$0]  (!%p3919_p0), %s179_s30, 2048, %s181_s4, %s161_s6, %s3820_s18, %s3821_s19, %s3822_s20  }
  0x28   : > { %p209_p2 = scmp.lt.s32.totalorder %s3817_s14, 3  ;;  %s3046_s26 = sshll.u32 %s3910_s25, 8 }
  0x29   : > { %s3374_s28 = sshll.u32 %s3813_s13, 12  ;;  %s194_s29 = scalar_lea.vmem [#allocation7], %s3046_s26 }
  0x2a   : > { %p3936_p3 = pnand %p3049_p13, %p209_p2  ;;  %s201_s3 = sshll.u32 %s194_s29, 4  ;;  %s202_s3 = int_to_ptr.vmem [resolvable:$true] %s201_s3 }
  0x2b   : > { %s200_s15 = scalar_lea.hbm %s4556_s1, %s3374_s28  ;;  %s191_s16 = scalar_lea.sflag [#allocation8], %s3910_s25 }
  0x2c   : > { %s3718_s0 = scalar_lea.vmem %s202_s3, 4096  ;;  %s3823_s30 = smov [#allocation7]  }
  0x2d   : > { %p3719_p5 = scmp.ne.s32.totalorder %s202_s3, %s3718_s0  ;;  %s3723_s4 = sshll.u32 %s3823_s30, 4  ;;  %s3724_s4 = int_to_ptr.vmem [resolvable:$false] %s3723_s4 }
  0x2e   : > { %s3725_s6 = scalar_lea.vmem %s3724_s4, 8192  ;;  %p3726_p7 = scmp.lt.s32.totalorder %s202_s3, %s3724_s4 }
  0x2f   : > { %p3721_p6 = pnand %p3719_p5, %p3679_p1  ;;  %p3727_p10 = scmp.lt.s32.totalorder %s3725_s6, %s3718_s0 }
  0x31   : > { %p3722_p4 = pneg %p3721_p6  ;;  %p3728_p13 = por %p3727_p10, %p3726_p7 }
  0x33   : > { %p3729_p2 = pnand %p3728_p13, %p3722_p4 }
  0x35   : > { %3732 = shalt.err (!%p3729_p2)
}
  0x36   : > { %3390 = dma.hbm_to_vmem [thread:$0]  (!%p3919_p0), %s200_s15, 4096, %s202_s3, %s191_s16, %s3821_s19, %s3821_s19, %s3822_s20  }
  0x37   : > { %213 = sbr.rel (%p3936_p3) target bundleno = 2121 (0x849), region = 28  ;;  %s3956_s25 = sand.u32 (!%p3936_p3), 1, %s3801_s10  }
  0x38   : > { %s3050_s18 = sshll.u32 (!%p3936_p3), %s3956_s25, 7  ;;  %s216_s0 = scalar_lea.sflag (!%p3936_p3), [#allocation5], %s3956_s25 }
  0x39   : > { %s3960_s26 = scalar_lea.vmem (!%p3936_p3), [#allocation4], %s3050_s18 }
  0x3c   : > { %3784 = dma.done.wait (%p3892_p8), %s216_s0, 2048  }
  0x3d   : > { %3786 = vsyncadd (%p3892_p8), %s216_s0, 4294965248  ;;  %s3051_s5 = sshll.u32 %s3956_s25, 8  ;;  %s225_s19 = scalar_lea.sflag [#allocation8], %s3956_s25 }
  0x3e   : > { %s3968_s20 = scalar_lea.vmem [#allocation7], %s3051_s5 }
  0x3f   : > { %3788 = dma.done.wait (%p3892_p8), %s225_s19, 4096  }
  0x40   : > { %3790 = vsyncadd (%p3892_p8), %s225_s19, 4294963200  ;;  %v3824_v0 = vmov 0   ;;  %v3977_v1 = vld [vmem:[%s3968_s20 + $0xe4] ss:$16 sps:$4 sm:$0xff]   ;;  %v3980_v2 = vld [vmem:[%s3968_s20 + $0xe0] ss:$16 sps:$4 sm:$0xff]  }
  0x41   : > { %509 = vmatprep.mubr.bf16.mxu0 %v3824_v0  ;;  %550 = vmatprep.mubr.bf16.mxu1 %v3824_v0  ;;  %v3984_v3 = vld [vmem:[%s3968_s20 + $0xc4] ss:$16 sps:$4 sm:$0xff]   ;;  %v3988_v4 = vld [vmem:[%s3968_s20 + $0xc0] ss:$16 sps:$4 sm:$0xff]   ;;  %v3995_v6 = vld [vmem:[%s3968_s20 + $0xec] ss:$16 sps:$4 sm:$0xff]  }
  0x42   : > { %477 = vmatprep.subr.bf16.mxu0 %v3977_v1  ;;  %v3992_v5 = vld [vmem:[%s3968_s20 + $0xa4] ss:$16 sps:$4 sm:$0xff]   ;;  %v3998_v7 = vld [vmem:[%s3968_s20 + $0xe8] ss:$16 sps:$4 sm:$0xff]   ;;  %v4002_v8 = vld [vmem:[%s3968_s20 + $0xa0] ss:$16 sps:$4 sm:$0xff]   ;;  %518 = vmatprep.subr.bf16.mxu1 %v3995_v6 }
  0x43   : > { %478 = vmatpush1.bf16.msra.mxu0 %v3980_v2  ;;  %v4007_v9 = vld [vmem:[%s3968_s20 + $0x84] ss:$16 sps:$4 sm:$0xff]   ;;  %519 = vmatpush1.bf16.msra.mxu1 %v3998_v7  ;;  %v4011_v10 = vld [vmem:[%s3968_s20 + $0xcc] ss:$16 sps:$4 sm:$0xff]   ;;  %v4014_v11 = vld [vmem:[%s3968_s20 + $0xc8] ss:$16 sps:$4 sm:$0xff]  }
  0x44   : > { %479 = vmatprep.subr.bf16.mxu0 %v3984_v3  ;;  %520 = vmatprep.subr.bf16.mxu1 %v4011_v10  ;;  %v4019_v12 = vld [vmem:[%s3968_s20 + $0x80] ss:$16 sps:$4 sm:$0xff]   ;;  %v4022_v13 = vld [vmem:[%s3968_s20 + $0x64] ss:$16 sps:$4 sm:$0xff]   ;;  %v4025_v14 = vld [vmem:[%s3968_s20 + $0xac] ss:$16 sps:$4 sm:$0xff]  }
  0x45   : > { %v4030_v15 = vld [vmem:[%s3968_s20 + $0xa8] ss:$16 sps:$4 sm:$0xff]   ;;  %v4034_v16 = vld [vmem:[%s3968_s20 + $0x8c] ss:$16 sps:$4 sm:$0xff]   ;;  %v4038_v17 = vld [vmem:[%s3968_s20 + $0x60] ss:$16 sps:$4 sm:$0xff]  }
  0x46   : > { %v4042_v18 = vld [vmem:[%s3968_s20 + $0x44] ss:$16 sps:$4 sm:$0xff]   ;;  %v4046_v19 = vld [vmem:[%s3968_s20 + $0x88] ss:$16 sps:$4 sm:$0xff]   ;;  %v4050_v20 = vld [vmem:[%s3968_s20 + $0x6c] ss:$16 sps:$4 sm:$0xff]  }
  0x47   : > { %480 = vmatpush1.bf16.msra.mxu0 %v3988_v4  ;;  %521 = vmatpush1.bf16.msra.mxu1 %v4014_v11  ;;  %v4054_v21 = vld [vmem:[%s3968_s20 + $0x40] ss:$16 sps:$4 sm:$0xff]   ;;  %v4057_v22 = vld [vmem:[%s3968_s20 + $0x24] ss:$16 sps:$4 sm:$0xff]   ;;  %v4062_v23 = vld [vmem:[%s3968_s20 + $0x68] ss:$16 sps:$4 sm:$0xff]  }
  0x48   : > { %481 = vmatprep.subr.bf16.mxu0 %v3992_v5  ;;  %522 = vmatprep.subr.bf16.mxu1 %v4025_v14  ;;  %v4065_v24 = vld [vmem:[%s3968_s20 + $0x20] ss:$16 sps:$4 sm:$0xff]   ;;  %v4069_v25 = vld [vmem:[%s3968_s20 + $0x4c] ss:$16 sps:$4 sm:$0xff]   ;;  %v4072_v26 = vld [vmem:[%s3968_s20 + $0x4] ss:$16 sps:$4 sm:$0xff]  }
  0x49   : > { %v4075_v27 = vld [vmem:[%s3968_s20 + $0x48] ss:$16 sps:$4 sm:$0xff]   ;;  %v4079_v28 = vld [vmem:[%s3968_s20 + $0x2c] ss:$16 sps:$4 sm:$0xff]   ;;  %v4084_v29 = vld [vmem:[%s3968_s20] ss:$16 sps:$4 sm:$0xff]  }
  0x4a   : > { %v4088_v30 = vld [vmem:[%s3968_s20 + $0x28] ss:$16 sps:$4 sm:$0xff]   ;;  %v4092_v31 = vld [vmem:[%s3968_s20 + $0xc] ss:$16 sps:$4 sm:$0xff]   ;;  %v3825_v33 = vmov 0.0|0.0   ;;  %s3375_s21 = smul.u32 112, %s3809_s12 }
  0x4b   : > { %482 = vmatpush1.bf16.msra.mxu0 %v4002_v8  ;;  %523 = vmatpush1.bf16.msra.mxu1 %v4030_v15  ;;  %v4100_v32 = vld [vmem:[%s3968_s20 + $0x8] ss:$16 sps:$4 sm:$0xff]   ;;  %s3052_s28 = sshll.u32 %s3956_s25, 5  ;;  %s3376_s29 = smul.u32 28, %s3809_s12 }
  0x4c   : > { %483 = vmatprep.subr.bf16.mxu0 %v4007_v9  ;;  %524 = vmatprep.subr.bf16.mxu1 %v4034_v16  ;;  %s277_s27 = scalar_lea.vmem %s3960_s26, %s3375_s21 [#allocation4]  ;;  %s4147_s3 = scalar_lea.vmem [#allocation9], %s3052_s28 }
  0x4d   : > { %v278_v34 = vld [vmem:[%s277_s27] sm:$0xff]  ;;  %v279_v44 = vld [vmem:[%s277_s27 + $0x8] sm:$0xff]  ;;  %s591_s7 = scalar_lea.vmem %s4147_s3, %s3376_s29 [#allocation9]  ;;  %s3091_s8 = smul.u32 80, %s3809_s12 }
  0x4e   : > { %v280_v35 = vunpack.c.l.bf16 %v278_v34  ;;  %v281_v36 = vunpack.c.h.bf16 %v278_v34  ;;  %v283_v48 = vunpack.c.h.bf16 %v279_v44  ;;  %v282_v50 = vunpack.c.l.bf16 %v279_v44  ;;  %s3129_s16 = smul.u32 20, %s3809_s12  ;;  %s3171_s5 = sshll.u32 %s3809_s12, 4 }
  0x4f   : > { %484 = vmatpush1.bf16.msra.mxu0 %v4019_v12  ;;  %525 = vmatpush1.bf16.msra.mxu1 %v4046_v19  ;;  %s2934_s15 = scalar_lea.vmem %s3960_s26, %s3091_s8 [#allocation4]  ;;  %s3131_s4 = smul.u32 48, %s3809_s12 }
  0x50   : > { %485 = vmatprep.subr.bf16.mxu0 %v4022_v13  ;;  %526 = vmatprep.subr.bf16.mxu1 %v4050_v20  ;;  %s2938_s30 = scalar_lea.vmem %s4147_s3, %s3129_s16 [#allocation9]  ;;  %s3169_s18 = smul.u32 12, %s3809_s12 }
  0x51   : > { %s2942_s6 = scalar_lea.vmem %s3960_s26, %s3131_s4 [#allocation4]  ;;  %s2949_s19 = scalar_lea.vmem %s3960_s26, %s3171_s5 [#allocation4] }
  0x52   : > { %s2946_s0 = scalar_lea.vmem %s4147_s3, %s3169_s18 [#allocation9]  ;;  %s1558_s27 = ssub.s32 4, %s3809_s12 }
  0x53   : > { %486 = vmatpush1.bf16.msra.mxu0 %v4038_v17  ;;  %527 = vmatpush1.bf16.msra.mxu1 %v4062_v23  ;;  %s3377_s28 = sshll.u32 %s1558_s27, 4 }
  0x54   : > { %487 = vmatprep.subr.bf16.mxu0 %v4042_v18  ;;  %528 = vmatprep.subr.bf16.mxu1 %v4069_v25  ;;  %s1563_s29 = scalar_lea.vmem %s3960_s26, %s3377_s28 [#allocation4] }
  0x57   : > { %488 = vmatpush1.bf16.msra.mxu0 %v4054_v21  ;;  %529 = vmatpush1.bf16.msra.mxu1 %v4075_v27 }
  0x58   : > { %489 = vmatprep.subr.bf16.mxu0 %v4057_v22  ;;  %530 = vmatprep.subr.bf16.mxu1 %v4079_v28 }
  0x5b   : > { %490 = vmatpush1.bf16.msra.mxu0 %v4065_v24  ;;  %531 = vmatpush1.bf16.msra.mxu1 %v4088_v30 }
  0x5c   : > { %491 = vmatprep.subr.bf16.mxu0 %v4072_v26  ;;  %532 = vmatprep.subr.bf16.mxu1 %v4092_v31 }
  0x5f   : > { %492 = vmatpush1.bf16.msra.mxu0 %v4084_v29  ;;  %533 = vmatpush1.bf16.msra.mxu1 %v4100_v32 }
  0x60   : > { %799 = vmatprep.subr.bf16.mxu0 %v3977_v1  ;;  %840 = vmatprep.subr.bf16.mxu1 %v3995_v6 }
  0x62   : > { %510 = vmatmul.mubr.bf16.vlgmr.msra.gmra.mxu0 %v3825_v33  ;;  %551 = vmatmul.mubr.bf16.vlgmr.msra.gmra.mxu1 %v3825_v33 }
  0x63   : > { %800 = vmatpush1.bf16.msra.mxu0 %v3980_v2  ;;  %831 = vmatprep.mubr.bf16.mxu0 %v3824_v0 }
  0x64   : > { %801 = vmatprep.subr.bf16.mxu0 %v3984_v3  ;;  %841 = vmatpush1.bf16.msra.mxu1 %v3998_v7 }
  0x65   : > { %842 = vmatprep.subr.bf16.mxu1 %v4011_v10  ;;  %872 = vmatprep.mubr.bf16.mxu1 %v3824_v0 }
  0x67   : > { %802 = vmatpush1.bf16.msra.mxu0 %v3988_v4 }
  0x68   : > { %803 = vmatprep.subr.bf16.mxu0 %v3992_v5  ;;  %843 = vmatpush1.bf16.msra.mxu1 %v4014_v11 }
  0x69   : > { %844 = vmatprep.subr.bf16.mxu1 %v4025_v14 }
  0x6b   : > { %804 = vmatpush1.bf16.msra.mxu0 %v4002_v8 }
  0x6c   : > { %805 = vmatprep.subr.bf16.mxu0 %v4007_v9  ;;  %845 = vmatpush1.bf16.msra.mxu1 %v4030_v15 }
  0x6d   : > { %846 = vmatprep.subr.bf16.mxu1 %v4034_v16 }
  0x6f   : > { %806 = vmatpush1.bf16.msra.mxu0 %v4019_v12 }
  0x70   : > { %807 = vmatprep.subr.bf16.mxu0 %v4022_v13  ;;  %847 = vmatpush1.bf16.msra.mxu1 %v4046_v19 }
  0x71   : > { %848 = vmatprep.subr.bf16.mxu1 %v4050_v20 }
  0x73   : > { %808 = vmatpush1.bf16.msra.mxu0 %v4038_v17 }
  0x74   : > { %809 = vmatprep.subr.bf16.mxu0 %v4042_v18  ;;  %849 = vmatpush1.bf16.msra.mxu1 %v4062_v23 }
  0x75   : > { %850 = vmatprep.subr.bf16.mxu1 %v4069_v25 }
  0x77   : > { %810 = vmatpush1.bf16.msra.mxu0 %v4054_v21 }
  0x78   : > { %811 = vmatprep.subr.bf16.mxu0 %v4057_v22  ;;  %851 = vmatpush1.bf16.msra.mxu1 %v4075_v27 }
  0x79   : > { %852 = vmatprep.subr.bf16.mxu1 %v4079_v28 }
  0x7b   : > { %812 = vmatpush1.bf16.msra.mxu0 %v4065_v24 }
  0x7c   : > { %813 = vmatprep.subr.bf16.mxu0 %v4072_v26  ;;  %853 = vmatpush1.bf16.msra.mxu1 %v4088_v30 }
  0x7d   : > { %854 = vmatprep.subr.bf16.mxu1 %v4092_v31 }
  0x7f   : > { %814 = vmatpush1.bf16.msra.mxu0 %v4084_v29 }
  0x80   : > { %1121 = vmatprep.subr.bf16.mxu0 %v3977_v1  ;;  %855 = vmatpush1.bf16.msra.mxu1 %v4100_v32 }
  0x81   : > { %1162 = vmatprep.subr.bf16.mxu1 %v3995_v6 }
 0x122   : > { %v511_v37 = vpop.f32.mrf.mxu0  ;;  %v552_v45 = vpop.f32.mrf.mxu1 }
 0x123   : > { %v559_v38 = vadd.f32 %v511_v37, %v280_v35  ;;  %v561_v53 = vadd.f32 %v552_v45, %v282_v50 }
 0x124   : > { %v513_v39 = vpop.f32.mrf.mxu0  ;;  %v554_v47 = vpop.f32.mrf.mxu1 }
 0x125   : > { %v3087_v40 = vmul.f32 -1.442695, %v559_v38  ;;  %v560_v41 = vadd.f32 %v513_v39, %v281_v36  ;;  %v562_v52 = vadd.f32 %v554_v47, %v283_v48 }
 0x126   : > { %v515_v42 = vpop.f32.mrf.mxu0  ;;  %v556_v49 = vpop.f32.mrf.mxu1 }
 0x127   : > { %3549 = vpow2.f32 %v3087_v40  ;;  %v3088_v43 = vmul.f32 -1.442695, %v560_v41  ;;  %v3089_v54 = vmul.f32 -1.442695, %v562_v52  ;;  %v3092_v40 = vld [vmem:[%s2934_s15 + $0x10] sm:$0xff] }
 0x128   : > { %v516_v46 = vpop.f32.mrf.mxu0  ;;  %v557_v51 = vpop.f32.mrf.mxu1  ;;  %v602_v41 = vunpack.c.l.bf16 %v3092_v40  ;;  %v603_v42 = vunpack.c.h.bf16 %v3092_v40 }
 0x129   : > { %3551 = vpow2.f32 %v3088_v43 }
 0x12a   : > { %3553 = vtanh.f32 %v561_v53 }
 0x12b   : > { %3555 = vpow2.f32 %v3089_v54  ;;  %v3093_v54 = vld [vmem:[%s2934_s15 + $0x18] sm:$0xff]  ;;  %s3249_s15 = smul.u32 4294967248, %s3809_s12 }
 0x12d   : > { %s2960_s16 = scalar_lea.vmem %s3960_s26, %s3249_s15 [#allocation4]  ;;  %s2846_s15 = scalar_lea.sflag [#allocation6], %s3956_s25 }
 0x134   : > { %v3550_v55 = vpop.eup %3549 }
 0x135   : > { %v566_v56 = vadd.f32 1.0, %v3550_v55 }
 0x136   : > { %v3552_v57 = vpop.eup %3551 }
 0x137   : > { %3557 = vrcp.f32 %v566_v56  ;;  %v572_v58 = vadd.f32 1.0, %v3552_v57  ;;  %v3554_v59 = vpop.eup %3553  ;;  %v604_v56 = vunpack.c.l.bf16 %v3093_v54 }
 0x138   : > { %v3556_v60 = vpop.eup %3555 }
 0x139   : > { %3559 = vrcp.f32 %v572_v58  ;;  %v579_v63 = vadd.f32 1.0, %v3556_v60 }
 0x13b   : > { %3561 = vrcp.f32 %v579_v63 }
 0x144   : > { %v3558_v61 = vpop.eup %3557 }
 0x145   : > { %v583_v34 = vmul.f32 %v3558_v61, %v3554_v59 }
 0x146   : > { %v3560_v62 = vpop.eup %3559 }
 0x147   : > { %v582_v33 = vmul.f32 0.0, %v3560_v62 }
 0x148   : > { %v3562_v36 = vpop.eup %3561 }
 0x149   : > { %v4142_v35 = vadd.f32 %v583_v34, %v582_v33 }
 0x14b   : > { %3563 = vtanh.f32 %v4142_v35 }
 0x158   : > { %v3564_v37 = vpop.eup %3563 }
 0x159   : > { %v586_v38 = vmul.f32 %v3564_v37, %v3562_v36 }
 0x15b   : > { %v589_v39 = vpack.c.bf16 %v586_v38, %v586_v38 }
 0x15d   : > { %592 = vst [vmem:[%s591_s7] sm:$0xf] %v589_v39  ;;  %832 = vmatmul.mubr.bf16.vlgmr.msra.gmra.mxu0 %v589_v39  ;;  %873 = vmatmul.mubr.bf16.vlgmr.msra.gmra.mxu1 %v589_v39  ;;  %s3248_s7 = sshll.u32 %s1558_s27, 2  ;;  %s3370_s27 = sshll.u32 %s3809_s12, 6 }
 0x15e   : > { %1122 = vmatpush1.bf16.msra.mxu0 %v3980_v2  ;;  %1163 = vmatpush1.bf16.msra.mxu1 %v3998_v7  ;;  %s1877_s8 = scalar_lea.vmem %s4147_s3, %s3248_s7 [#allocation9] }
 0x15f   : > { %1123 = vmatprep.subr.bf16.mxu0 %v3984_v3  ;;  %1164 = vmatprep.subr.bf16.mxu1 %v4011_v10 }
 0x160   : > { %1153 = vmatprep.mubr.bf16.mxu0 %v3824_v0  ;;  %1194 = vmatprep.mubr.bf16.mxu1 %v3824_v0 }
 0x162   : > { %1124 = vmatpush1.bf16.msra.mxu0 %v3988_v4  ;;  %1165 = vmatpush1.bf16.msra.mxu1 %v4014_v11 }
 0x163   : > { %1125 = vmatprep.subr.bf16.mxu0 %v3992_v5  ;;  %1166 = vmatprep.subr.bf16.mxu1 %v4025_v14 }
 0x166   : > { %1126 = vmatpush1.bf16.msra.mxu0 %v4002_v8  ;;  %1167 = vmatpush1.bf16.msra.mxu1 %v4030_v15 }
 0x167   : > { %1127 = vmatprep.subr.bf16.mxu0 %v4007_v9  ;;  %1168 = vmatprep.subr.bf16.mxu1 %v4034_v16 }
 0x16a   : > { %1128 = vmatpush1.bf16.msra.mxu0 %v4019_v12  ;;  %1169 = vmatpush1.bf16.msra.mxu1 %v4046_v19 }
 0x16b   : > { %1129 = vmatprep.subr.bf16.mxu0 %v4022_v13  ;;  %1170 = vmatprep.subr.bf16.mxu1 %v4050_v20 }
 0x16e   : > { %1130 = vmatpush1.bf16.msra.mxu0 %v4038_v17  ;;  %1171 = vmatpush1.bf16.msra.mxu1 %v4062_v23 }
 0x16f   : > { %1131 = vmatprep.subr.bf16.mxu0 %v4042_v18  ;;  %1172 = vmatprep.subr.bf16.mxu1 %v4069_v25 }
 0x172   : > { %1132 = vmatpush1.bf16.msra.mxu0 %v4054_v21  ;;  %1173 = vmatpush1.bf16.msra.mxu1 %v4075_v27 }
 0x173   : > { %1133 = vmatprep.subr.bf16.mxu0 %v4057_v22  ;;  %1174 = vmatprep.subr.bf16.mxu1 %v4079_v28 }
 0x176   : > { %1134 = vmatpush1.bf16.msra.mxu0 %v4065_v24  ;;  %1175 = vmatpush1.bf16.msra.mxu1 %v4088_v30 }
 0x177   : > { %1135 = vmatprep.subr.bf16.mxu0 %v4072_v26  ;;  %1176 = vmatprep.subr.bf16.mxu1 %v4092_v31 }
 0x17a   : > { %1136 = vmatpush1.bf16.msra.mxu0 %v4084_v29  ;;  %1177 = vmatpush1.bf16.msra.mxu1 %v4100_v32 }
 0x17b   : > { %1442 = vmatprep.subr.bf16.mxu0 %v3977_v1  ;;  %1483 = vmatprep.subr.bf16.mxu1 %v3995_v6  ;;  %v605_v6 = vunpack.c.h.bf16 %v3093_v54  ;;  %v4251_v54 = vld [vmem:[%s3968_s20 + $0xc4] ss:$16 sps:$4 sm:$0xff]  }
 0x21d   : > { %v833_v43 = vpop.f32.mrf.mxu0  ;;  %v874_v44 = vpop.f32.mrf.mxu1 }
 0x21e   : > { %v881_v45 = vadd.f32 %v833_v43, %v602_v41  ;;  %v883_v59 = vadd.f32 %v874_v44, %v604_v56  ;;  %v4260_v56 = vld [vmem:[%s3968_s20 + $0xc8] ss:$16 sps:$4 sm:$0xff]  }
 0x21f   : > { %v835_v46 = vpop.f32.mrf.mxu0  ;;  %v876_v47 = vpop.f32.mrf.mxu1 }
 0x220   : > { %v3126_v48 = vmul.f32 -1.442695, %v881_v45  ;;  %v882_v49 = vadd.f32 %v835_v46, %v603_v42  ;;  %v884_v55 = vadd.f32 %v876_v47, %v605_v6  ;;  %v4254_v6 = vld [vmem:[%s3968_s20 + $0xcc] ss:$16 sps:$4 sm:$0xff]  }
 0x221   : > { %v837_v50 = vpop.f32.mrf.mxu0  ;;  %v878_v51 = vpop.f32.mrf.mxu1 }
 0x222   : > { %3565 = vpow2.f32 %v3126_v48  ;;  %v3127_v52 = vmul.f32 -1.442695, %v882_v49  ;;  %v3128_v57 = vmul.f32 -1.442695, %v884_v55  ;;  %v4235_v51 = vld [vmem:[%s3968_s20 + $0xe4] ss:$16 sps:$4 sm:$0xff]  }
 0x223   : > { %v838_v53 = vpop.f32.mrf.mxu0  ;;  %v879_v1 = vpop.f32.mrf.mxu1  ;;  %v4257_v55 = vld [vmem:[%s3968_s20 + $0xc0] ss:$16 sps:$4 sm:$0xff]  }
 0x224   : > { %3567 = vpow2.f32 %v3127_v52  ;;  %v4238_v52 = vld [vmem:[%s3968_s20 + $0xec] ss:$16 sps:$4 sm:$0xff]   ;;  %v4241_v53 = vld [vmem:[%s3968_s20 + $0xe0] ss:$16 sps:$4 sm:$0xff]   ;;  %v4244_v1 = vld [vmem:[%s3968_s20 + $0xe8] ss:$16 sps:$4 sm:$0xff]  }
 0x225   : > { %3569 = vpow2.f32 %v3128_v57  ;;  %v4267_v57 = vld [vmem:[%s3968_s20 + $0xa4] ss:$16 sps:$4 sm:$0xff]  }
 0x22f   : > { %v3566_v58 = vpop.eup %3565 }
 0x230   : > { %v888_v60 = vadd.f32 1.0, %v3566_v58  ;;  %v4270_v58 = vld [vmem:[%s3968_s20 + $0xac] ss:$16 sps:$4 sm:$0xff]  }
 0x231   : > { %v3568_v61 = vpop.eup %3567 }
 0x232   : > { %3571 = vrcp.f32 %v888_v60  ;;  %v894_v62 = vadd.f32 1.0, %v3568_v61  ;;  %v3570_v63 = vpop.eup %3569  ;;  %v4276_v60 = vld [vmem:[%s3968_s20 + $0xa8] ss:$16 sps:$4 sm:$0xff]   ;;  %v4283_v61 = vld [vmem:[%s3968_s20 + $0x84] ss:$16 sps:$4 sm:$0xff]  }
 0x233   : > { %3573 = vtanh.f32 %v883_v59  ;;  %v901_v37 = vadd.f32 1.0, %v3570_v63  ;;  %v4273_v59 = vld [vmem:[%s3968_s20 + $0xa0] ss:$16 sps:$4 sm:$0xff]  }
 0x234   : > { %3575 = vrcp.f32 %v894_v62  ;;  %v4286_v62 = vld [vmem:[%s3968_s20 + $0x8c] ss:$16 sps:$4 sm:$0xff]   ;;  %v4289_v63 = vld [vmem:[%s3968_s20 + $0x80] ss:$16 sps:$4 sm:$0xff]  }
 0x235   : > { %3577 = vrcp.f32 %v901_v37  ;;  %v4305_v37 = vld [vmem:[%s3968_s20 + $0x60] ss:$16 sps:$4 sm:$0xff]  }
 0x23f   : > { %v3572_v33 = vpop.eup %3571 }
 0x240   : > { %v3574_v34 = vpop.eup %3573 }
 0x241   : > { %v3576_v36 = vpop.eup %3575  ;;  %v905_v38 = vmul.f32 %v3574_v34, %v3572_v33  ;;  %v4292_v33 = vld [vmem:[%s3968_s20 + $0x88] ss:$16 sps:$4 sm:$0xff]   ;;  %v4297_v34 = vld [vmem:[%s3968_s20 + $0x64] ss:$16 sps:$4 sm:$0xff]  }
 0x242   : > { %v904_v39 = vmul.f32 %v3576_v36, %v4142_v35  ;;  %v3578_v41 = vpop.eup %3577  ;;  %v4300_v36 = vld [vmem:[%s3968_s20 + $0x6c] ss:$16 sps:$4 sm:$0xff]  }
 0x244   : > { %v4187_v40 = vadd.f32 %v905_v38, %v904_v39  ;;  %v4308_v38 = vld [vmem:[%s3968_s20 + $0x68] ss:$16 sps:$4 sm:$0xff]   ;;  %v4313_v39 = vld [vmem:[%s3968_s20 + $0x44] ss:$16 sps:$4 sm:$0xff]  }
 0x246   : > { %3579 = vtanh.f32 %v4187_v40 }
 0x253   : > { %v3580_v42 = vpop.eup %3579 }
 0x254   : > { %v908_v43 = vmul.f32 %v3580_v42, %v3578_v41  ;;  %v4321_v41 = vld [vmem:[%s3968_s20 + $0x40] ss:$16 sps:$4 sm:$0xff]   ;;  %v4324_v42 = vld [vmem:[%s3968_s20 + $0x48] ss:$16 sps:$4 sm:$0xff]  }
 0x256   : > { %v911_v44 = vpack.c.bf16 %v908_v43, %v908_v43  ;;  %v4329_v43 = vld [vmem:[%s3968_s20 + $0x24] ss:$16 sps:$4 sm:$0xff]  }
 0x258   : > { %3130 = vst [vmem:[%s2938_s30 + $0x4] sm:$0xf] %v911_v44  ;;  %1154 = vmatmul.mubr.bf16.vlgmr.msra.gmra.mxu0 %v911_v44  ;;  %1195 = vmatmul.mubr.bf16.vlgmr.msra.gmra.mxu1 %v911_v44  ;;  %v4332_v44 = vld [vmem:[%s3968_s20 + $0x2c] ss:$16 sps:$4 sm:$0xff]   ;;  %s3287_s30 = smul.u32 4294967284, %s3809_s12 }
 0x259   : > { %1443 = vmatpush1.bf16.msra.mxu0 %v3980_v2  ;;  %1484 = vmatpush1.bf16.msra.mxu1 %v3998_v7  ;;  %v3132_v2 = vld [vmem:[%s2942_s6 + $0x20] sm:$0xff] }
 0x25a   : > { %1444 = vmatprep.subr.bf16.mxu0 %v3984_v3  ;;  %1485 = vmatprep.subr.bf16.mxu1 %v4011_v10  ;;  %v924_v3 = vunpack.c.l.bf16 %v3132_v2  ;;  %s2964_s4 = scalar_lea.vmem %s4147_s3, %s3287_s30 [#allocation9] }
 0x25b   : > { %1474 = vmatprep.mubr.bf16.mxu0 %v3824_v0  ;;  %1515 = vmatprep.mubr.bf16.mxu1 %v3824_v0 }
 0x25d   : > { %1445 = vmatpush1.bf16.msra.mxu0 %v3988_v4  ;;  %1486 = vmatpush1.bf16.msra.mxu1 %v4014_v11  ;;  %v925_v4 = vunpack.c.h.bf16 %v3132_v2  ;;  %v4337_v2 = vld [vmem:[%s3968_s20 + $0x20] ss:$16 sps:$4 sm:$0xff]  }
 0x25e   : > { %1446 = vmatprep.subr.bf16.mxu0 %v3992_v5  ;;  %1487 = vmatprep.subr.bf16.mxu1 %v4025_v14 }
 0x261   : > { %1447 = vmatpush1.bf16.msra.mxu0 %v4002_v8  ;;  %1488 = vmatpush1.bf16.msra.mxu1 %v4030_v15 }
 0x262   : > { %1448 = vmatprep.subr.bf16.mxu0 %v4007_v9  ;;  %1489 = vmatprep.subr.bf16.mxu1 %v4034_v16 }
 0x265   : > { %1449 = vmatpush1.bf16.msra.mxu0 %v4019_v12  ;;  %1490 = vmatpush1.bf16.msra.mxu1 %v4046_v19 }
 0x266   : > { %1450 = vmatprep.subr.bf16.mxu0 %v4022_v13  ;;  %1491 = vmatprep.subr.bf16.mxu1 %v4050_v20 }
 0x269   : > { %1451 = vmatpush1.bf16.msra.mxu0 %v4038_v17  ;;  %1492 = vmatpush1.bf16.msra.mxu1 %v4062_v23 }
 0x26a   : > { %1452 = vmatprep.subr.bf16.mxu0 %v4042_v18  ;;  %1493 = vmatprep.subr.bf16.mxu1 %v4069_v25  ;;  %v3133_v18 = vld [vmem:[%s2942_s6 + $0x28] sm:$0xff]  ;;  %s3289_s6 = smul.u32 4294967216, %s3809_s12 }
 0x26b   : > { %v927_v19 = vunpack.c.h.bf16 %v3133_v18 }
 0x26c   : > { %s2968_s18 = scalar_lea.vmem %s3960_s26, %s3289_s6 [#allocation4] }
 0x26d   : > { %1453 = vmatpush1.bf16.msra.mxu0 %v4054_v21  ;;  %1494 = vmatpush1.bf16.msra.mxu1 %v4075_v27  ;;  %v926_v21 = vunpack.c.l.bf16 %v3133_v18 }
 0x26e   : > { %1454 = vmatprep.subr.bf16.mxu0 %v4057_v22  ;;  %1495 = vmatprep.subr.bf16.mxu1 %v4079_v28 }
 0x271   : > { %1455 = vmatpush1.bf16.msra.mxu0 %v4065_v24  ;;  %1496 = vmatpush1.bf16.msra.mxu1 %v4088_v30 }
 0x272   : > { %1456 = vmatprep.subr.bf16.mxu0 %v4072_v26  ;;  %1497 = vmatprep.subr.bf16.mxu1 %v4092_v31 }
 0x275   : > { %1457 = vmatpush1.bf16.msra.mxu0 %v4084_v29  ;;  %1498 = vmatpush1.bf16.msra.mxu1 %v4100_v32 }
 0x276   : > { %1763 = vmatprep.subr.bf16.mxu0 %v4235_v51  ;;  %1804 = vmatprep.subr.bf16.mxu1 %v4238_v52 }
 0x318   : > { %v1155_v5 = vpop.f32.mrf.mxu0  ;;  %v1196_v7 = vpop.f32.mrf.mxu1 }
 0x319   : > { %v1203_v8 = vadd.f32 %v1155_v5, %v924_v3  ;;  %v1205_v24 = vadd.f32 %v1196_v7, %v926_v21  ;;  %v4340_v3 = vld [vmem:[%s3968_s20 + $0x28] ss:$16 sps:$4 sm:$0xff]   ;;  %v4348_v5 = vld [vmem:[%s3968_s20 + $0xc] ss:$16 sps:$4 sm:$0xff]   ;;  %v4353_v7 = vld [vmem:[%s3968_s20] ss:$16 sps:$4 sm:$0xff]  }
 0x31a   : > { %v1157_v9 = vpop.f32.mrf.mxu0  ;;  %v1198_v10 = vpop.f32.mrf.mxu1 }
 0x31b   : > { %v3166_v11 = vmul.f32 -1.442695, %v1203_v8  ;;  %v1204_v12 = vadd.f32 %v1157_v9, %v925_v4  ;;  %v1206_v20 = vadd.f32 %v1198_v10, %v927_v19  ;;  %v4345_v4 = vld [vmem:[%s3968_s20 + $0x4] ss:$16 sps:$4 sm:$0xff]   ;;  %v4356_v8 = vld [vmem:[%s3968_s20 + $0x8] ss:$16 sps:$4 sm:$0xff]  }
 0x31c   : > { %v1159_v13 = vpop.f32.mrf.mxu0  ;;  %v1200_v14 = vpop.f32.mrf.mxu1  ;;  %v3172_v9 = vld [vmem:[%s2949_s19 + $0x30] sm:$0xff] }
 0x31d   : > { %3581 = vpow2.f32 %v3166_v11  ;;  %v3167_v15 = vmul.f32 -1.442695, %v1204_v12  ;;  %v3168_v22 = vmul.f32 -1.442695, %v1206_v20  ;;  %v1245_v10 = vunpack.c.l.bf16 %v3172_v9 }
 0x31e   : > { %v1160_v16 = vpop.f32.mrf.mxu0  ;;  %v1201_v17 = vpop.f32.mrf.mxu1  ;;  %v1246_v11 = vunpack.c.h.bf16 %v3172_v9 }
 0x31f   : > { %3583 = vpow2.f32 %v3167_v15 }
 0x320   : > { %3585 = vpow2.f32 %v3168_v22 }
 0x32a   : > { %v3582_v23 = vpop.eup %3581 }
 0x32b   : > { %v1210_v25 = vadd.f32 1.0, %v3582_v23 }
 0x32c   : > { %v3584_v26 = vpop.eup %3583 }
 0x32d   : > { %3587 = vrcp.f32 %v1210_v25  ;;  %v1216_v27 = vadd.f32 1.0, %v3584_v26  ;;  %v3586_v28 = vpop.eup %3585 }
 0x32e   : > { %3589 = vtanh.f32 %v1205_v24  ;;  %v1223_v32 = vadd.f32 1.0, %v3586_v28  ;;  %v3173_v24 = vld [vmem:[%s2949_s19 + $0x38] sm:$0xff]  ;;  %s3329_s19 = smul.u32 4294967184, %s3809_s12 }
 0x32f   : > { %3591 = vrcp.f32 %v1216_v27  ;;  %v1248_v25 = vunpack.c.h.bf16 %v3173_v24  ;;  %v1247_v27 = vunpack.c.l.bf16 %v3173_v24 }
 0x330   : > { %3593 = vrcp.f32 %v1223_v32 }
 0x33a   : > { %v3588_v29 = vpop.eup %3587 }
 0x33b   : > { %v3590_v30 = vpop.eup %3589 }
 0x33c   : > { %v3592_v31 = vpop.eup %3591  ;;  %v1227_v35 = vmul.f32 %v3590_v30, %v3588_v29 }
 0x33d   : > { %v1226_v45 = vmul.f32 %v3592_v31, %v4187_v40  ;;  %v3594_v47 = vpop.eup %3593  ;;  %v4316_v40 = vld [vmem:[%s3968_s20 + $0x4c] ss:$16 sps:$4 sm:$0xff]   ;;  %s3209_s20 = sshll.u32 %s3809_s12, 2 }
 0x33e   : > { %s2952_s21 = scalar_lea.vmem %s4147_s3, %s3209_s20 [#allocation9]  ;;  %s2976_s20 = scalar_lea.vmem %s3960_s26, %s3329_s19 [#allocation4] }
 0x33f   : > { %v4227_v46 = vadd.f32 %v1227_v35, %v1226_v45  ;;  %s3367_s26 = smul.u32 4294967268, %s3809_s12 }
 0x341   : > { %3595 = vtanh.f32 %v4227_v46  ;;  %s2980_s28 = scalar_lea.vmem %s4147_s3, %s3367_s26 [#allocation9] }
 0x34e   : > { %v3596_v48 = vpop.eup %3595 }
 0x34f   : > { %v1230_v49 = vmul.f32 %v3596_v48, %v3594_v47 }
 0x351   : > { %v1233_v50 = vpack.c.bf16 %v1230_v49, %v1230_v49 }
 0x353   : > { %3170 = vst [vmem:[%s2946_s0 + $0x8] sm:$0xf] %v1233_v50  ;;  %1475 = vmatmul.mubr.bf16.vlgmr.msra.gmra.mxu0 %v1233_v50  ;;  %1516 = vmatmul.mubr.bf16.vlgmr.msra.gmra.mxu1 %v1233_v50  ;;  %s3327_s0 = smul.u32 4294967276, %s3809_s12  ;;  %s3826_s12 = smov [#allocation9]  }
 0x354   : > { %1795 = vmatprep.mubr.bf16.mxu0 %v3824_v0  ;;  %1836 = vmatprep.mubr.bf16.mxu1 %v3824_v0  ;;  %s3737_s30 = sshll.u32 %s3826_s12, 4  ;;  %s3738_s30 = int_to_ptr.vmem [resolvable:$false] %s3737_s30 }
 0x355   : > { %1764 = vmatpush1.bf16.msra.mxu0 %v4241_v53  ;;  %1805 = vmatpush1.bf16.msra.mxu1 %v4244_v1  ;;  %s2972_s5 = scalar_lea.vmem %s4147_s3, %s3327_s0 [#allocation9] }
 0x356   : > { %1765 = vmatprep.subr.bf16.mxu0 %v4251_v54  ;;  %1806 = vmatprep.subr.bf16.mxu1 %v4254_v6 }
 0x359   : > { %1766 = vmatpush1.bf16.msra.mxu0 %v4257_v55  ;;  %1807 = vmatpush1.bf16.msra.mxu1 %v4260_v56 }
 0x35a   : > { %1767 = vmatprep.subr.bf16.mxu0 %v4267_v57  ;;  %1808 = vmatprep.subr.bf16.mxu1 %v4270_v58 }
 0x35d   : > { %1768 = vmatpush1.bf16.msra.mxu0 %v4273_v59  ;;  %1809 = vmatpush1.bf16.msra.mxu1 %v4276_v60 }
 0x35e   : > { %1769 = vmatprep.subr.bf16.mxu0 %v4283_v61  ;;  %1810 = vmatprep.subr.bf16.mxu1 %v4286_v62 }
 0x361   : > { %1770 = vmatpush1.bf16.msra.mxu0 %v4289_v63  ;;  %1811 = vmatpush1.bf16.msra.mxu1 %v4292_v33 }
 0x362   : > { %1771 = vmatprep.subr.bf16.mxu0 %v4297_v34  ;;  %1812 = vmatprep.subr.bf16.mxu1 %v4300_v36 }
 0x365   : > { %1772 = vmatpush1.bf16.msra.mxu0 %v4305_v37  ;;  %1813 = vmatpush1.bf16.msra.mxu1 %v4308_v38 }
 0x366   : > { %1773 = vmatprep.subr.bf16.mxu0 %v4313_v39  ;;  %1814 = vmatprep.subr.bf16.mxu1 %v4316_v40 }
 0x369   : > { %1774 = vmatpush1.bf16.msra.mxu0 %v4321_v41  ;;  %1815 = vmatpush1.bf16.msra.mxu1 %v4324_v42 }
 0x36a   : > { %1775 = vmatprep.subr.bf16.mxu0 %v4329_v43  ;;  %1816 = vmatprep.subr.bf16.mxu1 %v4332_v44 }
 0x36d   : > { %1776 = vmatpush1.bf16.msra.mxu0 %v4337_v2  ;;  %1817 = vmatpush1.bf16.msra.mxu1 %v4340_v3 }
 0x36e   : > { %1777 = vmatprep.subr.bf16.mxu0 %v4345_v4  ;;  %1818 = vmatprep.subr.bf16.mxu1 %v4348_v5 }
 0x371   : > { %1778 = vmatpush1.bf16.msra.mxu0 %v4353_v7  ;;  %1819 = vmatpush1.bf16.msra.mxu1 %v4356_v8 }
 0x372   : > { %2085 = vmatprep.subr.bf16.mxu0 %v4235_v51  ;;  %2126 = vmatprep.subr.bf16.mxu1 %v4238_v52 }
 0x413   : > { %v1476_v12 = vpop.f32.mrf.mxu0  ;;  %v1517_v13 = vpop.f32.mrf.mxu1 }
 0x414   : > { %v1524_v14 = vadd.f32 %v1476_v12, %v1245_v10  ;;  %v1526_v30 = vadd.f32 %v1517_v13, %v1247_v27 }
 0x415   : > { %v1478_v15 = vpop.f32.mrf.mxu0  ;;  %v1519_v16 = vpop.f32.mrf.mxu1 }
 0x416   : > { %v3206_v17 = vmul.f32 -1.442695, %v1524_v14  ;;  %v1525_v18 = vadd.f32 %v1478_v15, %v1246_v11  ;;  %v1527_v26 = vadd.f32 %v1519_v16, %v1248_v25 }
 0x417   : > { %v1480_v19 = vpop.f32.mrf.mxu0  ;;  %v1521_v20 = vpop.f32.mrf.mxu1 }
 0x418   : > { %3597 = vpow2.f32 %v3206_v17  ;;  %v3207_v21 = vmul.f32 -1.442695, %v1525_v18  ;;  %v3208_v28 = vmul.f32 -1.442695, %v1527_v26 }
 0x419   : > { %v1481_v22 = vpop.f32.mrf.mxu0  ;;  %v1522_v23 = vpop.f32.mrf.mxu1 }
 0x41a   : > { %3599 = vpow2.f32 %v3207_v21 }
 0x41b   : > { %3601 = vpow2.f32 %v3208_v28 }
 0x425   : > { %v3598_v29 = vpop.eup %3597 }
 0x426   : > { %v1531_v31 = vadd.f32 1.0, %v3598_v29 }
 0x427   : > { %v3600_v32 = vpop.eup %3599 }
 0x428   : > { %3603 = vrcp.f32 %v1531_v31  ;;  %v1537_v35 = vadd.f32 1.0, %v3600_v32  ;;  %v3602_v45 = vpop.eup %3601 }
 0x429   : > { %3605 = vtanh.f32 %v1526_v30  ;;  %v1544_v50 = vadd.f32 1.0, %v3602_v45  ;;  %v1565_v30 = vld [vmem:[%s1563_s29 + $0x8] sm:$0xff] }
 0x42a   : > { %3607 = vrcp.f32 %v1537_v35  ;;  %v1569_v31 = vunpack.c.h.bf16 %v1565_v30  ;;  %v1568_v35 = vunpack.c.l.bf16 %v1565_v30 }
 0x42b   : > { %3609 = vrcp.f32 %v1544_v50 }
 0x435   : > { %v3604_v47 = vpop.eup %3603 }
 0x436   : > { %v3606_v48 = vpop.eup %3605 }
 0x437   : > { %v3608_v49 = vpop.eup %3607  ;;  %v1548_v9 = vmul.f32 %v3606_v48, %v3604_v47 }
 0x438   : > { %v1547_v10 = vmul.f32 %v3608_v49, %v4227_v46  ;;  %v3610_v12 = vpop.eup %3609  ;;  %v1564_v46 = vld [vmem:[%s1563_s29] sm:$0xff] }
 0x439   : > { %v1566_v16 = vunpack.c.l.bf16 %v1564_v46  ;;  %v1567_v17 = vunpack.c.h.bf16 %v1564_v46 }
 0x43a   : > { %v4367_v11 = vadd.f32 %v1548_v9, %v1547_v10 }
 0x43c   : > { %3611 = vtanh.f32 %v4367_v11 }
 0x449   : > { %v3612_v13 = vpop.eup %3611 }
 0x44a   : > { %v1551_v14 = vmul.f32 %v3612_v13, %v3610_v12 }
 0x44c   : > { %v1554_v15 = vpack.c.bf16 %v1551_v14, %v1551_v14 }
 0x44e   : > { %3210 = vst [vmem:[%s2952_s21 + $0xc] sm:$0xf] %v1554_v15  ;;  %1796 = vmatmul.mubr.bf16.vlgmr.msra.gmra.mxu0 %v1554_v15  ;;  %1837 = vmatmul.mubr.bf16.vlgmr.msra.gmra.mxu1 %v1554_v15  ;;  %s2867_s21 = sshll.u32 %s4147_s3, 4  ;;  %s4501_s21 = int_to_ptr.vmem [resolvable:$true] %s2867_s21 }
 0x44f   : > { %2086 = vmatpush1.bf16.msra.mxu0 %v4241_v53  ;;  %2127 = vmatpush1.bf16.msra.mxu1 %v4244_v1  ;;  %p3740_p3 = scmp.lt.s32.totalorder %s4501_s21, %s3738_s30 }
 0x450   : > { %2087 = vmatprep.subr.bf16.mxu0 %v4251_v54  ;;  %2128 = vmatprep.subr.bf16.mxu1 %v4254_v6 }
 0x451   : > { %2117 = vmatprep.mubr.bf16.mxu0 %v3824_v0  ;;  %2158 = vmatprep.mubr.bf16.mxu1 %v3824_v0 }
 0x453   : > { %2088 = vmatpush1.bf16.msra.mxu0 %v4257_v55  ;;  %2129 = vmatpush1.bf16.msra.mxu1 %v4260_v56 }
 0x454   : > { %2089 = vmatprep.subr.bf16.mxu0 %v4267_v57  ;;  %2130 = vmatprep.subr.bf16.mxu1 %v4270_v58 }
 0x457   : > { %2090 = vmatpush1.bf16.msra.mxu0 %v4273_v59  ;;  %2131 = vmatpush1.bf16.msra.mxu1 %v4276_v60 }
 0x458   : > { %2091 = vmatprep.subr.bf16.mxu0 %v4283_v61  ;;  %2132 = vmatprep.subr.bf16.mxu1 %v4286_v62 }
 0x45b   : > { %2092 = vmatpush1.bf16.msra.mxu0 %v4289_v63  ;;  %2133 = vmatpush1.bf16.msra.mxu1 %v4292_v33 }
 0x45c   : > { %2093 = vmatprep.subr.bf16.mxu0 %v4297_v34  ;;  %2134 = vmatprep.subr.bf16.mxu1 %v4300_v36 }
 0x45f   : > { %2094 = vmatpush1.bf16.msra.mxu0 %v4305_v37  ;;  %2135 = vmatpush1.bf16.msra.mxu1 %v4308_v38 }
 0x460   : > { %2095 = vmatprep.subr.bf16.mxu0 %v4313_v39  ;;  %2136 = vmatprep.subr.bf16.mxu1 %v4316_v40 }
 0x463   : > { %2096 = vmatpush1.bf16.msra.mxu0 %v4321_v41  ;;  %2137 = vmatpush1.bf16.msra.mxu1 %v4324_v42 }
 0x464   : > { %2097 = vmatprep.subr.bf16.mxu0 %v4329_v43  ;;  %2138 = vmatprep.subr.bf16.mxu1 %v4332_v44 }
 0x467   : > { %2098 = vmatpush1.bf16.msra.mxu0 %v4337_v2  ;;  %2139 = vmatpush1.bf16.msra.mxu1 %v4340_v3 }
 0x468   : > { %2099 = vmatprep.subr.bf16.mxu0 %v4345_v4  ;;  %2140 = vmatprep.subr.bf16.mxu1 %v4348_v5 }
 0x46b   : > { %2100 = vmatpush1.bf16.msra.mxu0 %v4353_v7  ;;  %2141 = vmatpush1.bf16.msra.mxu1 %v4356_v8 }
 0x46c   : > { %2407 = vmatprep.subr.bf16.mxu0 %v4235_v51  ;;  %2448 = vmatprep.subr.bf16.mxu1 %v4238_v52 }
 0x50e   : > { %v1797_v18 = vpop.f32.mrf.mxu0  ;;  %v1838_v19 = vpop.f32.mrf.mxu1 }
 0x50f   : > { %v1845_v20 = vadd.f32 %v1797_v18, %v1566_v16  ;;  %v1847_v48 = vadd.f32 %v1838_v19, %v1568_v35 }
 0x510   : > { %v1799_v21 = vpop.f32.mrf.mxu0  ;;  %v1840_v22 = vpop.f32.mrf.mxu1 }
 0x511   : > { %v3245_v23 = vmul.f32 -1.442695, %v1845_v20  ;;  %v1846_v24 = vadd.f32 %v1799_v21, %v1567_v17  ;;  %v1848_v32 = vadd.f32 %v1840_v22, %v1569_v31 }
 0x512   : > { %v1801_v25 = vpop.f32.mrf.mxu0  ;;  %v1842_v26 = vpop.f32.mrf.mxu1 }
 0x513   : > { %3613 = vpow2.f32 %v3245_v23  ;;  %v3246_v27 = vmul.f32 -1.442695, %v1846_v24  ;;  %v3247_v45 = vmul.f32 -1.442695, %v1848_v32 }
 0x514   : > { %v1802_v28 = vpop.f32.mrf.mxu0  ;;  %v1843_v29 = vpop.f32.mrf.mxu1 }
 0x515   : > { %3615 = vpow2.f32 %v3246_v27 }
 0x516   : > { %3617 = vpow2.f32 %v3247_v45 }
 0x520   : > { %v3614_v47 = vpop.eup %3613 }
 0x521   : > { %v1852_v49 = vadd.f32 1.0, %v3614_v47  ;;  %v3251_v47 = vld [vmem:[%s2960_s16 + $0x58] sm:$0xff] }
 0x522   : > { %v3616_v50 = vpop.eup %3615 }
 0x523   : > { %3619 = vrcp.f32 %v1852_v49  ;;  %v1858_v9 = vadd.f32 1.0, %v3616_v50  ;;  %v3618_v10 = vpop.eup %3617  ;;  %v1890_v49 = vunpack.c.l.bf16 %v3251_v47 }
 0x524   : > { %3621 = vtanh.f32 %v1847_v48  ;;  %v1865_v15 = vadd.f32 1.0, %v3618_v10 }
 0x525   : > { %3623 = vrcp.f32 %v1858_v9 }
 0x526   : > { %3625 = vrcp.f32 %v1865_v15 }
 0x530   : > { %v3620_v12 = vpop.eup %3619 }
 0x531   : > { %v3622_v13 = vpop.eup %3621 }
 0x532   : > { %v3624_v14 = vpop.eup %3623  ;;  %v1869_v46 = vmul.f32 %v3622_v13, %v3620_v12 }
 0x533   : > { %v1868_v16 = vmul.f32 %v3624_v14, %v4367_v11  ;;  %v3626_v18 = vpop.eup %3625  ;;  %v3250_v11 = vld [vmem:[%s2960_s16 + $0x50] sm:$0xff]  ;;  %s3733_s16 = scalar_lea.vmem %s4501_s21, 512 }
 0x534   : > { %v1888_v22 = vunpack.c.l.bf16 %v3250_v11  ;;  %v1889_v23 = vunpack.c.h.bf16 %v3250_v11  ;;  %p3734_p8 = scmp.ne.s32.totalorder %s4501_s21, %s3733_s16 }
 0x535   : > { %v4411_v17 = vadd.f32 %v1869_v46, %v1868_v16 }
 0x536   : > { %p3735_p0 = pnand %p3734_p8, %p3896_p9 }
 0x537   : > { %3627 = vtanh.f32 %v4411_v17 }
 0x538   : > { %p3736_p1 = pneg %p3735_p0 }
 0x544   : > { %v3628_v19 = vpop.eup %3627 }
 0x545   : > { %v1872_v20 = vmul.f32 %v3628_v19, %v3626_v18 }
 0x547   : > { %v1875_v21 = vpack.c.bf16 %v1872_v20, %v1872_v20 }
 0x549   : > { %1878 = vst [vmem:[%s1877_s8] sm:$0xf] %v1875_v21  ;;  %2118 = vmatmul.mubr.bf16.vlgmr.msra.gmra.mxu0 %v1875_v21  ;;  %2159 = vmatmul.mubr.bf16.vlgmr.msra.gmra.mxu1 %v1875_v21  ;;  %s4507_s8 = scalar_lea.hbm %s4557_s2, %s3370_s27 }
 0x54a   : > { %2408 = vmatpush1.bf16.msra.mxu0 %v4241_v53  ;;  %2449 = vmatpush1.bf16.msra.mxu1 %v4244_v1 }
 0x54b   : > { %2409 = vmatprep.subr.bf16.mxu0 %v4251_v54  ;;  %2450 = vmatprep.subr.bf16.mxu1 %v4254_v6 }
 0x54c   : > { %2439 = vmatprep.mubr.bf16.mxu0 %v3824_v0  ;;  %2480 = vmatprep.mubr.bf16.mxu1 %v3824_v0 }
 0x54e   : > { %2410 = vmatpush1.bf16.msra.mxu0 %v4257_v55  ;;  %2451 = vmatpush1.bf16.msra.mxu1 %v4260_v56 }
 0x54f   : > { %2411 = vmatprep.subr.bf16.mxu0 %v4267_v57  ;;  %2452 = vmatprep.subr.bf16.mxu1 %v4270_v58 }
 0x552   : > { %2412 = vmatpush1.bf16.msra.mxu0 %v4273_v59  ;;  %2453 = vmatpush1.bf16.msra.mxu1 %v4276_v60 }
 0x553   : > { %2413 = vmatprep.subr.bf16.mxu0 %v4283_v61  ;;  %2454 = vmatprep.subr.bf16.mxu1 %v4286_v62 }
 0x556   : > { %2414 = vmatpush1.bf16.msra.mxu0 %v4289_v63  ;;  %2455 = vmatpush1.bf16.msra.mxu1 %v4292_v33 }
 0x557   : > { %2415 = vmatprep.subr.bf16.mxu0 %v4297_v34  ;;  %2456 = vmatprep.subr.bf16.mxu1 %v4300_v36 }
 0x55a   : > { %2416 = vmatpush1.bf16.msra.mxu0 %v4305_v37  ;;  %2457 = vmatpush1.bf16.msra.mxu1 %v4308_v38 }
 0x55b   : > { %2417 = vmatprep.subr.bf16.mxu0 %v4313_v39  ;;  %2458 = vmatprep.subr.bf16.mxu1 %v4316_v40 }
 0x55e   : > { %2418 = vmatpush1.bf16.msra.mxu0 %v4321_v41  ;;  %2459 = vmatpush1.bf16.msra.mxu1 %v4324_v42 }
 0x55f   : > { %2419 = vmatprep.subr.bf16.mxu0 %v4329_v43  ;;  %2460 = vmatprep.subr.bf16.mxu1 %v4332_v44 }
 0x562   : > { %2420 = vmatpush1.bf16.msra.mxu0 %v4337_v2  ;;  %2461 = vmatpush1.bf16.msra.mxu1 %v4340_v3 }
 0x563   : > { %2421 = vmatprep.subr.bf16.mxu0 %v4345_v4  ;;  %2462 = vmatprep.subr.bf16.mxu1 %v4348_v5 }
 0x566   : > { %2422 = vmatpush1.bf16.msra.mxu0 %v4353_v7  ;;  %2463 = vmatpush1.bf16.msra.mxu1 %v4356_v8 }
 0x567   : > { %2729 = vmatprep.subr.bf16.mxu0 %v4235_v51  ;;  %2770 = vmatprep.subr.bf16.mxu1 %v4238_v52  ;;  %v1891_v52 = vunpack.c.h.bf16 %v3251_v47 }
 0x609   : > { %v2119_v24 = vpop.f32.mrf.mxu0  ;;  %v2160_v25 = vpop.f32.mrf.mxu1 }
 0x60a   : > { %v2167_v26 = vadd.f32 %v2119_v24, %v1888_v22  ;;  %v2169_v10 = vadd.f32 %v2160_v25, %v1890_v49 }
 0x60b   : > { %v2121_v27 = vpop.f32.mrf.mxu0  ;;  %v2162_v28 = vpop.f32.mrf.mxu1 }
 0x60c   : > { %v3284_v29 = vmul.f32 -1.442695, %v2167_v26  ;;  %v2168_v30 = vadd.f32 %v2121_v27, %v1889_v23  ;;  %v2170_v48 = vadd.f32 %v2162_v28, %v1891_v52 }
 0x60d   : > { %v2123_v31 = vpop.f32.mrf.mxu0  ;;  %v2164_v32 = vpop.f32.mrf.mxu1 }
 0x60e   : > { %3629 = vpow2.f32 %v3284_v29  ;;  %v3285_v35 = vmul.f32 -1.442695, %v2168_v30  ;;  %v3286_v50 = vmul.f32 -1.442695, %v2170_v48  ;;  %v3330_v31 = vld [vmem:[%s2976_s20 + $0x70] sm:$0xff] }
 0x60f   : > { %v2124_v45 = vpop.f32.mrf.mxu0  ;;  %v2165_v51 = vpop.f32.mrf.mxu1  ;;  %v2532_v32 = vunpack.c.l.bf16 %v3330_v31 }
 0x610   : > { %3631 = vpow2.f32 %v3285_v35  ;;  %v2533_v35 = vunpack.c.h.bf16 %v3330_v31 }
 0x611   : > { %3633 = vpow2.f32 %v3286_v50 }
 0x61b   : > { %v3630_v9 = vpop.eup %3629 }
 0x61c   : > { %v2174_v12 = vadd.f32 1.0, %v3630_v9 }
 0x61d   : > { %v3632_v13 = vpop.eup %3631 }
 0x61e   : > { %3635 = vrcp.f32 %v2174_v12  ;;  %v2180_v14 = vadd.f32 1.0, %v3632_v13  ;;  %v3634_v15 = vpop.eup %3633 }
 0x61f   : > { %3637 = vtanh.f32 %v2169_v10  ;;  %v2187_v19 = vadd.f32 1.0, %v3634_v15  ;;  %v3331_v15 = vld [vmem:[%s2976_s20 + $0x78] sm:$0xff] }
 0x620   : > { %3639 = vrcp.f32 %v2180_v14 }
 0x621   : > { %3641 = vrcp.f32 %v2187_v19 }
 0x62b   : > { %v3636_v46 = vpop.eup %3635 }
 0x62c   : > { %v3638_v16 = vpop.eup %3637 }
 0x62d   : > { %v3640_v18 = vpop.eup %3639  ;;  %v2191_v20 = vmul.f32 %v3638_v16, %v3636_v46  ;;  %v2535_v46 = vunpack.c.h.bf16 %v3331_v15 }
 0x62e   : > { %v2190_v21 = vmul.f32 %v3640_v18, %v4411_v17  ;;  %v3642_v22 = vpop.eup %3641  ;;  %v2534_v18 = vunpack.c.l.bf16 %v3331_v15 }
 0x630   : > { %v4454_v11 = vadd.f32 %v2191_v20, %v2190_v21 }
 0x632   : > { %3643 = vtanh.f32 %v4454_v11 }
 0x63f   : > { %v3644_v23 = vpop.eup %3643 }
 0x640   : > { %v2194_v24 = vmul.f32 %v3644_v23, %v3642_v22 }
 0x642   : > { %v2197_v25 = vpack.c.bf16 %v2194_v24, %v2194_v24 }
 0x644   : > { %3288 = vst [vmem:[%s2964_s4 + $0x14] sm:$0xf] %v2197_v25  ;;  %2440 = vmatmul.mubr.bf16.vlgmr.msra.gmra.mxu0 %v2197_v25  ;;  %2481 = vmatmul.mubr.bf16.vlgmr.msra.gmra.mxu1 %v2197_v25  ;;  %s3739_s4 = scalar_lea.vmem %s3738_s30, 1024 }
 0x645   : > { %2730 = vmatpush1.bf16.msra.mxu0 %v4241_v53  ;;  %2771 = vmatpush1.bf16.msra.mxu1 %v4244_v1  ;;  %p3741_p5 = scmp.lt.s32.totalorder %s3739_s4, %s3733_s16 }
 0x646   : > { %2731 = vmatprep.subr.bf16.mxu0 %v4251_v54  ;;  %2772 = vmatprep.subr.bf16.mxu1 %v4254_v6 }
 0x647   : > { %2761 = vmatprep.mubr.bf16.mxu0 %v3824_v0  ;;  %2802 = vmatprep.mubr.bf16.mxu1 %v3824_v0  ;;  %v3290_v0 = vld [vmem:[%s2968_s18 + $0x60] sm:$0xff]  ;;  %p3742_p6 = por %p3741_p5, %p3740_p3 }
 0x648   : > { %v2210_v53 = vunpack.c.l.bf16 %v3290_v0  ;;  %v2211_v1 = vunpack.c.h.bf16 %v3290_v0 }
 0x649   : > { %2732 = vmatpush1.bf16.msra.mxu0 %v4257_v55  ;;  %2773 = vmatpush1.bf16.msra.mxu1 %v4260_v56  ;;  %p3743_p4 = pnand %p3742_p6, %p3736_p1 }
 0x64a   : > { %2733 = vmatprep.subr.bf16.mxu0 %v4267_v57  ;;  %2774 = vmatprep.subr.bf16.mxu1 %v4270_v58 }
 0x64d   : > { %2734 = vmatpush1.bf16.msra.mxu0 %v4273_v59  ;;  %2775 = vmatpush1.bf16.msra.mxu1 %v4276_v60 }
 0x64e   : > { %2735 = vmatprep.subr.bf16.mxu0 %v4283_v61  ;;  %2776 = vmatprep.subr.bf16.mxu1 %v4286_v62 }
 0x651   : > { %2736 = vmatpush1.bf16.msra.mxu0 %v4289_v63  ;;  %2777 = vmatpush1.bf16.msra.mxu1 %v4292_v33 }
 0x652   : > { %2737 = vmatprep.subr.bf16.mxu0 %v4297_v34  ;;  %2778 = vmatprep.subr.bf16.mxu1 %v4300_v36  ;;  %v3291_v34 = vld [vmem:[%s2968_s18 + $0x68] sm:$0xff] }
 0x653   : > { %v2213_v36 = vunpack.c.h.bf16 %v3291_v34 }
 0x655   : > { %2738 = vmatpush1.bf16.msra.mxu0 %v4305_v37  ;;  %2779 = vmatpush1.bf16.msra.mxu1 %v4308_v38  ;;  %v2212_v38 = vunpack.c.l.bf16 %v3291_v34 }
 0x656   : > { %2739 = vmatprep.subr.bf16.mxu0 %v4313_v39  ;;  %2780 = vmatprep.subr.bf16.mxu1 %v4316_v40 }
 0x659   : > { %2740 = vmatpush1.bf16.msra.mxu0 %v4321_v41  ;;  %2781 = vmatpush1.bf16.msra.mxu1 %v4324_v42 }
 0x65a   : > { %2741 = vmatprep.subr.bf16.mxu0 %v4329_v43  ;;  %2782 = vmatprep.subr.bf16.mxu1 %v4332_v44 }
 0x65d   : > { %2742 = vmatpush1.bf16.msra.mxu0 %v4337_v2  ;;  %2783 = vmatpush1.bf16.msra.mxu1 %v4340_v3 }
 0x65e   : > { %2743 = vmatprep.subr.bf16.mxu0 %v4345_v4  ;;  %2784 = vmatprep.subr.bf16.mxu1 %v4348_v5 }
 0x661   : > { %2744 = vmatpush1.bf16.msra.mxu0 %v4353_v7  ;;  %2785 = vmatpush1.bf16.msra.mxu1 %v4356_v8 }
 0x704   : > { %v2441_v54 = vpop.f32.mrf.mxu0  ;;  %v2482_v6 = vpop.f32.mrf.mxu1 }
 0x705   : > { %v2489_v55 = vadd.f32 %v2441_v54, %v2210_v53  ;;  %v2491_v41 = vadd.f32 %v2482_v6, %v2212_v38 }
 0x706   : > { %v2443_v56 = vpop.f32.mrf.mxu0  ;;  %v2484_v57 = vpop.f32.mrf.mxu1 }
 0x707   : > { %v3324_v58 = vmul.f32 -1.442695, %v2489_v55  ;;  %v2490_v59 = vadd.f32 %v2443_v56, %v2211_v1  ;;  %v2492_v37 = vadd.f32 %v2484_v57, %v2213_v36 }
 0x708   : > { %v2445_v60 = vpop.f32.mrf.mxu0  ;;  %v2486_v61 = vpop.f32.mrf.mxu1 }
 0x709   : > { %3645 = vpow2.f32 %v3324_v58  ;;  %v3325_v62 = vmul.f32 -1.442695, %v2490_v59  ;;  %v3326_v39 = vmul.f32 -1.442695, %v2492_v37 }
 0x70a   : > { %v2446_v63 = vpop.f32.mrf.mxu0  ;;  %v2487_v33 = vpop.f32.mrf.mxu1 }
 0x70b   : > { %3647 = vpow2.f32 %v3325_v62 }
 0x70c   : > { %3649 = vpow2.f32 %v3326_v39 }
 0x716   : > { %v3646_v40 = vpop.eup %3645 }
 0x717   : > { %v2496_v42 = vadd.f32 1.0, %v3646_v40 }
 0x718   : > { %v3648_v43 = vpop.eup %3647 }
 0x719   : > { %3651 = vrcp.f32 %v2496_v42  ;;  %v2502_v44 = vadd.f32 1.0, %v3648_v43  ;;  %v3650_v2 = vpop.eup %3649 }
 0x71a   : > { %3653 = vtanh.f32 %v2491_v41  ;;  %v2509_v7 = vadd.f32 1.0, %v3650_v2 }
 0x71b   : > { %3655 = vrcp.f32 %v2502_v44 }
 0x71c   : > { %3657 = vrcp.f32 %v2509_v7 }
 0x726   : > { %v3652_v3 = vpop.eup %3651 }
 0x727   : > { %v3654_v4 = vpop.eup %3653 }
 0x728   : > { %v3656_v5 = vpop.eup %3655  ;;  %v2513_v8 = vmul.f32 %v3654_v4, %v3652_v3 }
 0x729   : > { %v2512_v17 = vmul.f32 %v3656_v5, %v4454_v11  ;;  %v3658_v27 = vpop.eup %3657 }
 0x72b   : > { %v2514_v26 = vadd.f32 %v2513_v8, %v2512_v17 }
 0x72d   : > { %3659 = vtanh.f32 %v2514_v26 }
 0x73a   : > { %v3660_v28 = vpop.eup %3659 }
 0x73b   : > { %v2516_v29 = vmul.f32 %v3660_v28, %v3658_v27 }
 0x73d   : > { %v2519_v30 = vpack.c.bf16 %v2516_v29, %v2516_v29 }
 0x73f   : > { %3328 = vst [vmem:[%s2972_s5 + $0x18] sm:$0xf] %v2519_v30  ;;  %2762 = vmatmul.mubr.bf16.vlgmr.msra.gmra.mxu0 %v2519_v30  ;;  %2803 = vmatmul.mubr.bf16.vlgmr.msra.gmra.mxu1 %v2519_v30 }
 0x7ff   : > { %v2763_v45 = vpop.f32.mrf.mxu0  ;;  %v2804_v51 = vpop.f32.mrf.mxu1 }
 0x800   : > { %v2811_v47 = vadd.f32 %v2763_v45, %v2532_v32  ;;  %v2813_v21 = vadd.f32 %v2804_v51, %v2534_v18 }
 0x801   : > { %v2765_v52 = vpop.f32.mrf.mxu0  ;;  %v2806_v48 = vpop.f32.mrf.mxu1 }
 0x802   : > { %v3364_v49 = vmul.f32 -1.442695, %v2811_v47  ;;  %v2812_v50 = vadd.f32 %v2765_v52, %v2533_v35  ;;  %v2814_v16 = vadd.f32 %v2806_v48, %v2535_v46 }
 0x803   : > { %v2767_v9 = vpop.f32.mrf.mxu0  ;;  %v2808_v10 = vpop.f32.mrf.mxu1 }
 0x804   : > { %3661 = vpow2.f32 %v3364_v49  ;;  %v3365_v12 = vmul.f32 -1.442695, %v2812_v50  ;;  %v3366_v19 = vmul.f32 -1.442695, %v2814_v16 }
 0x805   : > { %v2768_v13 = vpop.f32.mrf.mxu0  ;;  %v2809_v14 = vpop.f32.mrf.mxu1 }
 0x806   : > { %3663 = vpow2.f32 %v3365_v12 }
 0x807   : > { %3665 = vpow2.f32 %v3366_v19 }
 0x811   : > { %v3662_v20 = vpop.eup %3661 }
 0x812   : > { %v2818_v11 = vadd.f32 1.0, %v3662_v20 }
 0x813   : > { %v3664_v22 = vpop.eup %3663 }
 0x814   : > { %3667 = vrcp.f32 %v2818_v11  ;;  %v2824_v23 = vadd.f32 1.0, %v3664_v22  ;;  %v3666_v24 = vpop.eup %3665 }
 0x815   : > { %3669 = vtanh.f32 %v2813_v21  ;;  %v2831_v1 = vadd.f32 1.0, %v3666_v24 }
 0x816   : > { %3671 = vrcp.f32 %v2824_v23 }
 0x817   : > { %3673 = vrcp.f32 %v2831_v1 }
 0x821   : > { %v3668_v25 = vpop.eup %3667 }
 0x822   : > { %v3670_v0 = vpop.eup %3669 }
 0x823   : > { %v3672_v53 = vpop.eup %3671  ;;  %v2835_v54 = vmul.f32 %v3670_v0, %v3668_v25 }
 0x824   : > { %v2834_v6 = vmul.f32 %v3672_v53, %v2514_v26  ;;  %v3674_v56 = vpop.eup %3673 }
 0x826   : > { %v2836_v55 = vadd.f32 %v2835_v54, %v2834_v6 }
 0x828   : > { %3675 = vtanh.f32 %v2836_v55 }
 0x835   : > { %v3676_v57 = vpop.eup %3675 }
 0x836   : > { %v2838_v58 = vmul.f32 %v3676_v57, %v3674_v56 }
 0x838   : > { %v2841_v59 = vpack.c.bf16 %v2838_v58, %v2838_v58 }
 0x83a   : > { %3368 = vst [vmem:[%s2980_s28 + $0x1c] sm:$0xf] %v2841_v59 }
 0x83b   : > { %3746 = shalt.err (!%p3743_p4)
}
 0x83c   : > { %s3747_s3 = scalar_lea.hbm %s4507_s8, 512  ;;  %s3751_s0 = scalar_lea.hbm %s4557_s2, 1024 }
 0x83d   : > { %p3748_p7 = scmp.ne.s32.totalorder %s4507_s8, %s3747_s3  ;;  %p3752_p2 = scmp.lt.s32.totalorder %s4507_s8, %s4557_s2 }
 0x83e   : > { %p3753_p8 = scmp.lt.s32.totalorder %s3751_s0, %s3747_s3 }
 0x83f   : > { %p3749_p10 = pnand %p3748_p7, %p3896_p9 }
 0x840   : > { %p3754_p0 = por %p3753_p8, %p3752_p2 }
 0x841   : > { %p3750_p13 = pneg %p3749_p10 }
 0x843   : > { %p3755_p1 = pnand %p3754_p0, %p3750_p13 }
 0x845   : > { %3758 = shalt.err (!%p3755_p1)
}
 0x846   : > { %s3827_s20 = smov 64   ;;  %s3828_s26 = smov 128  }
 0x847   : > { %s3829_s27 = smov 4  }
 0x848   : > { %3382 = dma.vmem_to_hbm [thread:$0]  (%p3896_p9), %s4501_s21, 512, %s4507_s8, %s2846_s15, %s3827_s20, %s3828_s26, %s3829_s27  }
 0x849 PF: > { %s2882_s28 = sand.u32 1, %s3797_s9   ;;  %p3392_p3 = pnand %p3042_p12, %p3903_p11 }
 0x84a   : > { %s2883_s29 = scalar_lea.sflag [#allocation6], %s2882_s28 }
 0x84b   : > { %p3393_p5 = pneg %p3392_p3 }
 0x84d   : > { %3792 = dma.done.wait (%p3393_p5), %s2883_s29, 512  }
 0x84e   : > { %3794 = vsyncadd (%p3393_p5), %s2883_s29, 4294966784  ;;  %s21_s14 = sadd.s32 1, %s3817_s14   ;;  %s4566_s9 = smov %s3801_s10 }
 0x84f   : > { %p18_p6 = scmp.ge.s32.totalorder %s21_s14, 4   ;;  %s4567_s10 = smov %s3805_s11 }
 0x850   : > { %s4568_s11 = smov %s3901_s23  ;;  %s4569_s12 = smov %s3813_s13 }
 0x851   : > { %s4570_s13 = smov %s4572_s17  ;;  %20 = sbr.rel (!%p18_p6) target bundleno = 10 (0xa), region = 106 }
 0x856   :  { %2888 = vsyncpa [#allocation5], 1 }
 0x857   :  { %2890 = vsyncpa [#allocation5 + $0x1], 1 }
 0x858   :  { %2891 = vsyncpa [#allocation8], 1 }
 0x859   :  { %2893 = vsyncpa [#allocation8 + $0x1], 1 }
 0x85a   :  { %2894 = vsyncpa [#allocation6], 1 }
 0x85b   :  { %2896 = vsyncpa [#allocation6 + $0x1], 1 }

</bundles_post_ra>
